<compile_context>
chip_gen: v7x
topology: tpu7x:2x2x1
jax: 0.10.0
libtpu: 0.0.40
codegen_flags: <defaults>
</compile_context>

<pallas_src>
import numpy as np
from functools import partial

import jax
import jax.numpy as jnp
from jax.experimental import pallas as pl
from jax.experimental.pallas import tpu as pltpu

_NEG = -1e30  # "minus infinity" that stays finite under subtraction


def _final_fused_kernel(tok_ref, w2v_ref, u_word_ref, word_bias_ref, word_seg_ref,
                        word_segT_ref, u_sent_ref, sent_bias_ref, doc_seg_ref,
                        doc_segT_ref, w1_ref, w2_ref, w3_ref,
                        out_ref, attn_ref, *, n_docs):
    """One grid step = full forward pass of one batch element (everything in VMEM).

    tok_ref        (SL, 1)      int32  flattened word ids of this example
    w2v_ref        (V, E)       bf16   embedding table
    u_word_ref     (E, 1)       bf16   folded word relation:     Wm_word @ v_word
    word_bias_ref  (SL, 1)      f32    0 for valid word slots, -1e30 otherwise
    word_seg_ref   (S_pad, SL)  bf16   0/1 sentence-segment matrix (validity folded in)
    word_segT_ref  (SL, S_pad)  f32    its transpose (membership mask for per-seg max)
    u_sent_ref     (E, 1)       bf16   folded sentence relation:  Wm_sent @ v_sent
    sent_bias_ref  (S_pad, 1)   f32    0 for sentences covered by some document
    doc_seg_ref    (D_pad, S_pad) bf16 0/1 document-segment matrix
    doc_segT_ref   (S_pad, D_pad) f32  its transpose
    w1/w2/w3_ref                bf16   MLP weights (w3 zero-padded to 128 output lanes)
    out_ref        (D_pad, 128) f32    padded class logits (rows >= D are zeros)
    attn_ref       (S_pad, 128) f32    last document's sentence-attention, broadcast
    """
    f32 = jnp.float32
    bf16 = jnp.bfloat16

    sl = tok_ref.shape[0]
    vocab = w2v_ref.shape[0]
    s_pad = word_seg_ref.shape[0]
    d_pad = doc_seg_ref.shape[0]

    # ---- embedding lookup: one-hot (exact in bf16) matmul on the MXU ----
    # TODO(synk): at production vocab sizes keep w2v in HBM (memory_space=pl.ANY) and
    #             DMA-gather the SL rows instead; the one-hot path is O(SL*V) VMEM and
    #             hits v7x's 64 MiB VMEM ceiling first.
    vocab_iota = jax.lax.broadcasted_iota(jnp.int32, (sl, vocab), 1)
    onehot = (vocab_iota == tok_ref[...]).astype(bf16)                         # (SL, V)
    x = jnp.dot(onehot, w2v_ref[...], preferred_element_type=f32)              # (SL, E) f32
    x_bf = x.astype(bf16)

    # ---- word attention: all sentences in one segment-masked softmax pool ----
    w_scores = jnp.dot(x_bf, u_word_ref[...], preferred_element_type=f32)      # (SL, 1)
    masked_w = w_scores + word_bias_ref[...]                                   # invalid ~ -1e30
    seg_t = word_segT_ref[...] > 0.5                                           # (SL, S_pad)
    # Per-segment max (underflow-safe; matches the reference per-bag softmax shift).
    m_seg = jnp.max(jnp.where(seg_t, jnp.broadcast_to(masked_w, (sl, s_pad)), _NEG),
                    axis=0, keepdims=True)                                     # (1, S_pad)
    shift_w = jnp.max(jnp.where(seg_t, jnp.broadcast_to(m_seg, (sl, s_pad)), _NEG),
                      axis=1, keepdims=True)                                   # (SL, 1)
    e_w = jnp.exp(jnp.minimum(masked_w - shift_w, 0.0))                        # (SL, 1), <= 1
    seg_w = word_seg_ref[...]                                                  # (S_pad, SL)
    numer_w = jnp.dot(seg_w, (e_w * x).astype(bf16), preferred_element_type=f32)  # (S_pad, E)
    denom_w = jnp.dot(seg_w, e_w.astype(bf16), preferred_element_type=f32)        # (S_pad, 1)
    inv_w = pl.reciprocal(jnp.maximum(denom_w, 1e-30), approx=True)            # EUP, guarded
    cn = numer_w * inv_w                                                       # (S_pad, E)

    # ---- sentence attention: all documents in one segment-masked softmax pool ----
    s_scores = jnp.dot(cn.astype(bf16), u_sent_ref[...], preferred_element_type=f32)  # (S_pad,1)
    masked_s = s_scores + sent_bias_ref[...]
    doc_t = doc_segT_ref[...] > 0.5                                            # (S_pad, D_pad)
    m_doc = jnp.max(jnp.where(doc_t, jnp.broadcast_to(masked_s, (s_pad, d_pad)), _NEG),
                    axis=0, keepdims=True)                                     # (1, D_pad)
    shift_s = jnp.max(jnp.where(doc_t, jnp.broadcast_to(m_doc, (s_pad, d_pad)), _NEG),
                      axis=1, keepdims=True)                                   # (S_pad, 1)
    e_s = jnp.exp(jnp.minimum(masked_s - shift_s, 0.0))                        # (S_pad, 1)
    seg_d = doc_seg_ref[...]                                                   # (D_pad, S_pad)
    numer_d = jnp.dot(seg_d, (e_s * cn).astype(bf16), preferred_element_type=f32)  # (D_pad, E)
    denom_d = jnp.dot(seg_d, e_s.astype(bf16), preferred_element_type=f32)         # (D_pad, 1)
    inv_d = pl.reciprocal(jnp.maximum(denom_d, 1e-30), approx=True)
    doc_vec = numer_d * inv_d                                                  # (D_pad, E)

    # Sentence-attention weights normalized by the LAST document's denominator.
    # Rows outside the last document are meaningless by design and must be sliced away
    # by the wrapper (it keeps [doc_start:doc_end, 0:1]).
    inv_last = inv_d[n_docs - 1:n_docs, :]                                     # (1, 1)
    attn_ref[...] = jnp.broadcast_to(e_s * inv_last, (s_pad, attn_ref.shape[1]))

    # ---- ThreeLayerNet: Linear-ReLU-Linear-ReLU-Linear, no bias ----
    # TODO(synk): nn.Dropout(p=0.2) layers are identity here (inference semantics);
    #             PyTorch's training-mode RNG mask is not reproducible.
    h1 = jnp.maximum(jnp.dot(doc_vec.astype(bf16), w1_ref[...], preferred_element_type=f32), 0.0)
    h2 = jnp.maximum(jnp.dot(h1.astype(bf16), w2_ref[...], preferred_element_type=f32), 0.0)
    out_ref[...] = jnp.dot(h2.astype(bf16), w3_ref[...], preferred_element_type=f32)


def _round_up(x, m):
    return (x + m - 1) // m * m


def _shared_spec(shape):
    nd = len(shape)
    return pl.BlockSpec(tuple(shape), lambda *_: (0,) * nd,
                        memory_space=pltpu.MemorySpace.VMEM)


def _batched_spec(tail):
    tail = tuple(tail)
    return pl.BlockSpec((None,) + tail, lambda b: (b,) + (0,) * len(tail),
                        memory_space=pltpu.MemorySpace.VMEM)


@partial(jax.jit, static_argnames=("word_index", "document_index"))
def _final_forward_jit(tokens, w2v, params, word_index, document_index):
    """Fused forward. tokens: (S, L) or (B, S, L) int32.

    Returns (final_output (..., D, C), given_attention (..., n_sent_last_doc, 1)).
    All mask construction / weight folding below happens once at trace time (jit cache).
    """
    squeeze = tokens.ndim == 2
    if squeeze:
        tokens = tokens[None]
    B, S, L = tokens.shape
    V, E = w2v.shape
    SL = S * L
    D = len(document_index)
    C = params["w3"].shape[1]
    C_pad = _round_up(C, 128)
    S_pad = _round_up(S, 8)
    D_pad = _round_up(D, 8)

    # Static 0/1 segment matrices + validity biases, built once at trace time.
    word_seg = np.zeros((S_pad, SL), np.float32)
    word_bias = np.full((SL, 1), _NEG, np.float32)
    for s, (a, b) in enumerate(word_index):
        word_seg[s, s * L + a: s * L + b] = 1.0
        word_bias[s * L + a: s * L + b, 0] = 0.0
    doc_seg = np.zeros((D_pad, S_pad), np.float32)
    sent_bias = np.full((S_pad, 1), _NEG, np.float32)
    for d, (a, b) in enumerate(document_index):
        doc_seg[d, a:b] = 1.0
        sent_bias[a:b, 0] = 0.0

    bf16 = jnp.bfloat16
    # Fold relationMatrix @ relationVector -> one (E, 1) score vector per attention level.
    u_word = (params["wm_word"] @ params["v_word"]).astype(bf16)
    u_sent = (params["wm_sent"] @ params["v_sent"]).astype(bf16)
    # Pad the final Linear to 128 output lanes (lane-dense, unmasked stores).
    w3 = params["w3"]
    w3_pad = jnp.zeros((w3.shape[0], C_pad), jnp.float32).at[:, :C].set(w3).astype(bf16)

    inputs = (
        tokens.reshape(B, SL, 1).astype(jnp.int32),
        w2v.astype(bf16),
        u_word,
        jnp.asarray(word_bias),
        jnp.asarray(word_seg, dtype=bf16),
        jnp.asarray(word_seg.T.copy()),      # (SL, S_pad) f32 membership mask
        u_sent,
        jnp.asarray(sent_bias),
        jnp.asarray(doc_seg, dtype=bf16),
        jnp.asarray(doc_seg.T.copy()),       # (S_pad, D_pad) f32 membership mask
        params["w1"].astype(bf16),
        params["w2"].astype(bf16),
        w3_pad,
    )

    in_specs = [_batched_spec((SL, 1))] + [_shared_spec(a.shape) for a in inputs[1:]]
    out_specs = [_batched_spec((D_pad, C_pad)), _batched_spec((S_pad, 128))]
    out_shape = [jax.ShapeDtypeStruct((B, D_pad, C_pad), jnp.float32),
                 jax.ShapeDtypeStruct((B, S_pad, 128), jnp.float32)]

    # Explicit VMEM budget sized to the operand footprint (generous headroom, >= 8 MiB).
    io_bytes = sum(int(a.size) * a.dtype.itemsize for a in inputs)
    io_bytes += (D_pad * C_pad + S_pad * 128) * 4
    vmem_limit = int(max(8 * 1024 * 1024, 4 * io_bytes))

    out_pad, attn_pad = pl.pallas_call(
        partial(_final_fused_kernel, n_docs=D),
        grid=(B,),
        in_specs=in_specs,
        out_specs=out_specs,
        out_shape=out_shape,
        compiler_params=pltpu.CompilerParams(
            dimension_semantics=("parallel",),   # independent examples -> both v7x TCs
            vmem_limit_bytes=vmem_limit,
        ),
    )(*inputs)

    ds, de = document_index[-1]
    final_output = out_pad[:, :D, :C]
    given_attention = attn_pad[:, ds:de, 0:1]
    if squeeze:
        final_output = final_output[0]
        given_attention = given_attention[0]
    return final_output, given_attention


def final_forward(tokens, w2v, params, word_index, document_index):
    """Public wrapper: normalizes the index lists to hashable tuples so jit caches."""
    wi = tuple((int(a), int(b)) for a, b in word_index)
    di = tuple((int(a), int(b)) for a, b in document_index)
    return _final_forward_jit(tokens, w2v, params, wi, di)


# ---------------------------------------------------------------------------
# Pure-JAX reference (mirrors the PyTorch forward) for a correctness check.
# ---------------------------------------------------------------------------
def _ref_pool(bag, wm, v):
    s = (bag @ wm) @ v
    p = jax.nn.softmax(s.reshape(-1)).reshape(-1, 1)
    return jnp.sum(p * bag, axis=0), p


def reference_forward(tokens, w2v, params, word_index, document_index):
    emb = jnp.take(w2v, tokens, axis=0)
    cn = jnp.stack([_ref_pool(emb[i, a:b], params["wm_word"], params["v_word"])[0]
                    for i, (a, b) in enumerate(word_index)])
    docs, ga = [], None
    for (a, b) in document_index:
        vec, ga = _ref_pool(cn[a:b], params["wm_sent"], params["v_sent"])
        docs.append(vec)
    docs = jnp.stack(docs)
    h1 = jnp.maximum(docs @ params["w1"], 0.0)
    h2 = jnp.maximum(h1 @ params["w2"], 0.0)
    return h2 @ params["w3"], ga


if __name__ == "__main__":
    key = jax.random.PRNGKey(0)
    V, E = 32, 128           # vocab size, embedding_length
    S, L = 8, 16             # sentences, max words per sentence
    H1, H2, C = 128, 64, 12  # hidden1, hidden2, num_of_class (scaled-down)
    B = 2                    # batch of independent examples -> parallel grid axis

    ks = jax.random.split(key, 9)
    w2v = jax.random.normal(ks[0], (V, E), jnp.float32) * 0.1
    tokens = jax.random.randint(ks[1], (B, S, L), 0, V).astype(jnp.int32)

    word_index = ((0, 5), (1, 9), (0, 16), (3, 7), (2, 12), (0, 8), (4, 14), (0, 10))
    document_index = ((0, 3), (3, 6), (6, 8))

    params = {
        "wm_word": jax.random.normal(ks[2], (E, E), jnp.float32) / np.sqrt(E),
        "v_word":  jax.random.normal(ks[3], (E, 1), jnp.float32) / np.sqrt(E),
        "wm_sent": jax.random.normal(ks[4], (E, E), jnp.float32) / np.sqrt(E),
        "v_sent":  jax.random.normal(ks[5], (E, 1), jnp.float32) / np.sqrt(E),
        "w1":      jax.random.normal(ks[6], (E, H1), jnp.float32) / np.sqrt(E),
        "w2":      jax.random.normal(ks[7], (H1, H2), jnp.float32) / np.sqrt(H1),
        "w3":      jax.random.normal(ks[8], (H2, C), jnp.float32) / np.sqrt(H2),
    }

    final_output, given_attention = final_forward(tokens, w2v, params,
                                                  word_index, document_index)
    jax.block_until_ready((final_output, given_attention))

    # Second call hits the jit cache: no host mask rebuild, no retrace, no re-transfer.
    out2, ga2 = final_forward(tokens, w2v, params, word_index, document_index)
    jax.block_until_ready((out2, ga2))

    # Correctness vs. pure-f32 reference (tolerance accounts for bf16 MXU operands).
    for b in range(B):
        ref_out, ref_ga = reference_forward(tokens[b], w2v, params,
                                            word_index, document_index)
        np.testing.assert_allclose(np.asarray(final_output[b]), np.asarray(ref_out),
                                   rtol=2e-2, atol=2e-2)
        np.testing.assert_allclose(np.asarray(given_attention[b]), np.asarray(ref_ga),
                                   rtol=2e-2, atol=2e-2)

    ds, de = document_index[-1]
    assert final_output.shape == (B, len(document_index), C)
    assert given_attention.shape == (B, de - ds, 1)

    # Single-example path (exact module semantics, B=1).
    out1, ga1 = final_forward(tokens[0], w2v, params, word_index, document_index)
    jax.block_until_ready((out1, ga1))
    assert out1.shape == (len(document_index), C)
    assert ga1.shape == (de - ds, 1)
    np.testing.assert_allclose(np.asarray(out1), np.asarray(final_output[0]),
                               rtol=1e-5, atol=1e-5)

    print("KERNEL_OK")
</pallas_src>

<mosaic_0001>
module attributes {stable_mosaic.version = 11 : i64} {
  func.func @_final_fused_kernel(%arg0: i32, %arg1: memref<1x128x1xi32, #tpu.memory_space<vmem>>, %arg2: memref<32x128xbf16, #tpu.memory_space<vmem>>, %arg3: memref<128x1xbf16, #tpu.memory_space<vmem>>, %arg4: memref<128x1xf32, #tpu.memory_space<vmem>>, %arg5: memref<8x128xbf16, #tpu.memory_space<vmem>>, %arg6: memref<128x8xf32, #tpu.memory_space<vmem>>, %arg7: memref<128x1xbf16, #tpu.memory_space<vmem>>, %arg8: memref<8x1xf32, #tpu.memory_space<vmem>>, %arg9: memref<8x8xbf16, #tpu.memory_space<vmem>>, %arg10: memref<8x8xf32, #tpu.memory_space<vmem>>, %arg11: memref<128x128xbf16, #tpu.memory_space<vmem>>, %arg12: memref<128x64xbf16, #tpu.memory_space<vmem>>, %arg13: memref<64x128xbf16, #tpu.memory_space<vmem>>, %arg14: memref<1x8x128xf32, #tpu.memory_space<vmem>>, %arg15: memref<1x8x128xf32, #tpu.memory_space<vmem>>) attributes {dimension_semantics = [#tpu.dimension_semantics<parallel>], iteration_bounds = array<i64: 2>, scalar_prefetch = 0 : i64, scratch_operands = 0 : i64, tpu.core_type = #tpu.core_type<tc>, window_params = [{transform_indices = @transform_0, window_bounds = array<i64: 1, 128, 1>}, {pipeline_mode = #tpu.pipeline_mode<synchronous>, transform_indices = @transform_1, window_bounds = array<i64: 32, 128>}, {pipeline_mode = #tpu.pipeline_mode<synchronous>, transform_indices = @transform_2, window_bounds = array<i64: 128, 1>}, {pipeline_mode = #tpu.pipeline_mode<synchronous>, transform_indices = @transform_3, window_bounds = array<i64: 128, 1>}, {pipeline_mode = #tpu.pipeline_mode<synchronous>, transform_indices = @transform_4, window_bounds = array<i64: 8, 128>}, {pipeline_mode = #tpu.pipeline_mode<synchronous>, transform_indices = @transform_5, window_bounds = array<i64: 128, 8>}, {pipeline_mode = #tpu.pipeline_mode<synchronous>, transform_indices = @transform_6, window_bounds = array<i64: 128, 1>}, {pipeline_mode = #tpu.pipeline_mode<synchronous>, transform_indices = @transform_7, window_bounds = array<i64: 8, 1>}, {pipeline_mode = #tpu.pipeline_mode<synchronous>, transform_indices = @transform_8, window_bounds = array<i64: 8, 8>}, {pipeline_mode = #tpu.pipeline_mode<synchronous>, transform_indices = @transform_9, window_bounds = array<i64: 8, 8>}, {pipeline_mode = #tpu.pipeline_mode<synchronous>, transform_indices = @transform_10, window_bounds = array<i64: 128, 128>}, {pipeline_mode = #tpu.pipeline_mode<synchronous>, transform_indices = @transform_11, window_bounds = array<i64: 128, 64>}, {pipeline_mode = #tpu.pipeline_mode<synchronous>, transform_indices = @transform_12, window_bounds = array<i64: 64, 128>}, {transform_indices = @transform_13, window_bounds = array<i64: 1, 8, 128>}, {transform_indices = @transform_14, window_bounds = array<i64: 1, 8, 128>}]} {
    %0 = tpu.iota {dimensions = array<i32: 1>} : vector<128x32xi32>
    %c0 = arith.constant 0 : index
    %c0_0 = arith.constant 0 : index
    %c0_1 = arith.constant 0 : index
    %1 = vector.load %arg1[%c0, %c0_0, %c0_1] : memref<1x128x1xi32, #tpu.memory_space<vmem>>, vector<1x128x1xi32>
    %2 = vector.shape_cast %1 : vector<1x128x1xi32> to vector<128x1xi32>
    %3 = vector.broadcast %2 : vector<128x1xi32> to vector<128x32xi32>
    %4 = arith.cmpi eq, %0, %3 : vector<128x32xi32>
    %5 = arith.extui %4 : vector<128x32xi1> to vector<128x32xi32>
    %6 = arith.sitofp %5 : vector<128x32xi32> to vector<128x32xf32>
    %7 = arith.truncf %6 : vector<128x32xf32> to vector<128x32xbf16>
    %c0_2 = arith.constant 0 : index
    %c0_3 = arith.constant 0 : index
    %8 = vector.load %arg2[%c0_2, %c0_3] : memref<32x128xbf16, #tpu.memory_space<vmem>>, vector<32x128xbf16>
    %cst = arith.constant dense<0.000000e+00> : vector<128x128xf32>
    %9 = tpu.matmul %7, %8, %cst {dimension_numbers = #tpu.dot_dimension_numbers<[1], [0], [0], [1], [0, 0, 1, 1], [], []>} : vector<128x32xbf16>, vector<32x128xbf16>, vector<128x128xf32> -> vector<128x128xf32>
    %10 = arith.truncf %9 : vector<128x128xf32> to vector<128x128xbf16>
    %c0_4 = arith.constant 0 : index
    %c0_5 = arith.constant 0 : index
    %11 = vector.load %arg3[%c0_4, %c0_5] : memref<128x1xbf16, #tpu.memory_space<vmem>>, vector<128x1xbf16>
    %cst_6 = arith.constant dense<0.000000e+00> : vector<128x1xf32>
    %12 = tpu.matmul %10, %11, %cst_6 {dimension_numbers = #tpu.dot_dimension_numbers<[1], [0], [0], [1], [0, 0, 1, 1], [], []>} : vector<128x128xbf16>, vector<128x1xbf16>, vector<128x1xf32> -> vector<128x1xf32>
    %c0_7 = arith.constant 0 : index
    %c0_8 = arith.constant 0 : index
    %13 = vector.load %arg4[%c0_7, %c0_8] : memref<128x1xf32, #tpu.memory_space<vmem>>, vector<128x1xf32>
    %14 = arith.addf %12, %13 : vector<128x1xf32>
    %c0_9 = arith.constant 0 : index
    %c0_10 = arith.constant 0 : index
    %15 = vector.load %arg6[%c0_9, %c0_10] : memref<128x8xf32, #tpu.memory_space<vmem>>, vector<128x8xf32>
    %cst_11 = arith.constant 5.000000e-01 : f32
    %16 = vector.broadcast %cst_11 : f32 to vector<128x8xf32>
    %17 = arith.cmpf ogt, %15, %16 : vector<128x8xf32>
    %18 = vector.shape_cast %14 : vector<128x1xf32> to vector<128x1xf32>
    %19 = vector.broadcast %18 : vector<128x1xf32> to vector<128x8xf32>
    %cst_12 = arith.constant -1.000000e+30 : f32
    %20 = vector.broadcast %cst_12 : f32 to vector<128x8xf32>
    %21 = arith.select %17, %19, %20 : vector<128x8xi1>, vector<128x8xf32>
    %cst_13 = arith.constant dense<0xFF800000> : vector<8xf32>
    %22 = vector.multi_reduction <maximumf>, %21, %cst_13 [0] : vector<128x8xf32> to vector<8xf32>
    %23 = vector.shape_cast %22 : vector<8xf32> to vector<1x8xf32>
    %24 = vector.shape_cast %23 : vector<1x8xf32> to vector<1x8xf32>
    %25 = vector.broadcast %24 : vector<1x8xf32> to vector<128x8xf32>
    %cst_14 = arith.constant -1.000000e+30 : f32
    %26 = vector.broadcast %cst_14 : f32 to vector<128x8xf32>
    %27 = arith.select %17, %25, %26 : vector<128x8xi1>, vector<128x8xf32>
    %cst_15 = arith.constant dense<0xFF800000> : vector<128xf32>
    %28 = vector.multi_reduction <maximumf>, %27, %cst_15 [1] : vector<128x8xf32> to vector<128xf32>
    %29 = vector.shape_cast %28 : vector<128xf32> to vector<128x1xf32>
    %30 = arith.subf %14, %29 : vector<128x1xf32>
    %cst_16 = arith.constant 0.000000e+00 : f32
    %31 = vector.broadcast %cst_16 : f32 to vector<128x1xf32>
    %32 = arith.minimumf %30, %31 : vector<128x1xf32>
    %33 = math.exp %32 : vector<128x1xf32>
    %c0_17 = arith.constant 0 : index
    %c0_18 = arith.constant 0 : index
    %34 = vector.load %arg5[%c0_17, %c0_18] : memref<8x128xbf16, #tpu.memory_space<vmem>>, vector<8x128xbf16>
    %35 = vector.broadcast %33 : vector<128x1xf32> to vector<128x128xf32>
    %36 = arith.mulf %35, %9 : vector<128x128xf32>
    %37 = arith.truncf %36 : vector<128x128xf32> to vector<128x128xbf16>
    %cst_19 = arith.constant dense<0.000000e+00> : vector<8x128xf32>
    %38 = tpu.matmul %34, %37, %cst_19 {dimension_numbers = #tpu.dot_dimension_numbers<[1], [0], [0], [1], [0, 0, 1, 1], [], []>} : vector<8x128xbf16>, vector<128x128xbf16>, vector<8x128xf32> -> vector<8x128xf32>
    %39 = arith.truncf %33 : vector<128x1xf32> to vector<128x1xbf16>
    %cst_20 = arith.constant dense<0.000000e+00> : vector<8x1xf32>
    %40 = tpu.matmul %34, %39, %cst_20 {dimension_numbers = #tpu.dot_dimension_numbers<[1], [0], [0], [1], [0, 0, 1, 1], [], []>} : vector<8x128xbf16>, vector<128x1xbf16>, vector<8x1xf32> -> vector<8x1xf32>
    %cst_21 = arith.constant 1.000000e-30 : f32
    %41 = vector.broadcast %cst_21 : f32 to vector<8x1xf32>
    %42 = arith.maximumf %40, %41 : vector<8x1xf32>
    %43 = tpu.reciprocal %42 {approx = true} : vector<8x1xf32> -> vector<8x1xf32>
    %44 = vector.broadcast %43 : vector<8x1xf32> to vector<8x128xf32>
    %45 = arith.mulf %38, %44 : vector<8x128xf32>
    %46 = arith.truncf %45 : vector<8x128xf32> to vector<8x128xbf16>
    %c0_22 = arith.constant 0 : index
    %c0_23 = arith.constant 0 : index
    %47 = vector.load %arg7[%c0_22, %c0_23] : memref<128x1xbf16, #tpu.memory_space<vmem>>, vector<128x1xbf16>
    %cst_24 = arith.constant dense<0.000000e+00> : vector<8x1xf32>
    %48 = tpu.matmul %46, %47, %cst_24 {dimension_numbers = #tpu.dot_dimension_numbers<[1], [0], [0], [1], [0, 0, 1, 1], [], []>} : vector<8x128xbf16>, vector<128x1xbf16>, vector<8x1xf32> -> vector<8x1xf32>
    %c0_25 = arith.constant 0 : index
    %c0_26 = arith.constant 0 : index
    %49 = vector.load %arg8[%c0_25, %c0_26] : memref<8x1xf32, #tpu.memory_space<vmem>>, vector<8x1xf32>
    %50 = arith.addf %48, %49 : vector<8x1xf32>
    %c0_27 = arith.constant 0 : index
    %c0_28 = arith.constant 0 : index
    %51 = vector.load %arg10[%c0_27, %c0_28] : memref<8x8xf32, #tpu.memory_space<vmem>>, vector<8x8xf32>
    %cst_29 = arith.constant 5.000000e-01 : f32
    %52 = vector.broadcast %cst_29 : f32 to vector<8x8xf32>
    %53 = arith.cmpf ogt, %51, %52 : vector<8x8xf32>
    %54 = vector.shape_cast %50 : vector<8x1xf32> to vector<8x1xf32>
    %55 = vector.broadcast %54 : vector<8x1xf32> to vector<8x8xf32>
    %cst_30 = arith.constant -1.000000e+30 : f32
    %56 = vector.broadcast %cst_30 : f32 to vector<8x8xf32>
    %57 = arith.select %53, %55, %56 : vector<8x8xi1>, vector<8x8xf32>
    %cst_31 = arith.constant dense<0xFF800000> : vector<8xf32>
    %58 = vector.multi_reduction <maximumf>, %57, %cst_31 [0] : vector<8x8xf32> to vector<8xf32>
    %59 = vector.shape_cast %58 : vector<8xf32> to vector<1x8xf32>
    %60 = vector.shape_cast %59 : vector<1x8xf32> to vector<1x8xf32>
    %61 = vector.broadcast %60 : vector<1x8xf32> to vector<8x8xf32>
    %cst_32 = arith.constant -1.000000e+30 : f32
    %62 = vector.broadcast %cst_32 : f32 to vector<8x8xf32>
    %63 = arith.select %53, %61, %62 : vector<8x8xi1>, vector<8x8xf32>
    %cst_33 = arith.constant dense<0xFF800000> : vector<8xf32>
    %64 = vector.multi_reduction <maximumf>, %63, %cst_33 [1] : vector<8x8xf32> to vector<8xf32>
    %65 = vector.shape_cast %64 : vector<8xf32> to vector<8x1xf32>
    %66 = arith.subf %50, %65 : vector<8x1xf32>
    %cst_34 = arith.constant 0.000000e+00 : f32
    %67 = vector.broadcast %cst_34 : f32 to vector<8x1xf32>
    %68 = arith.minimumf %66, %67 : vector<8x1xf32>
    %69 = math.exp %68 : vector<8x1xf32>
    %c0_35 = arith.constant 0 : index
    %c0_36 = arith.constant 0 : index
    %70 = vector.load %arg9[%c0_35, %c0_36] : memref<8x8xbf16, #tpu.memory_space<vmem>>, vector<8x8xbf16>
    %71 = vector.broadcast %69 : vector<8x1xf32> to vector<8x128xf32>
    %72 = arith.mulf %71, %45 : vector<8x128xf32>
    %73 = arith.truncf %72 : vector<8x128xf32> to vector<8x128xbf16>
    %cst_37 = arith.constant dense<0.000000e+00> : vector<8x128xf32>
    %74 = tpu.matmul %70, %73, %cst_37 {dimension_numbers = #tpu.dot_dimension_numbers<[1], [0], [0], [1], [0, 0, 1, 1], [], []>} : vector<8x8xbf16>, vector<8x128xbf16>, vector<8x128xf32> -> vector<8x128xf32>
    %75 = arith.truncf %69 : vector<8x1xf32> to vector<8x1xbf16>
    %cst_38 = arith.constant dense<0.000000e+00> : vector<8x1xf32>
    %76 = tpu.matmul %70, %75, %cst_38 {dimension_numbers = #tpu.dot_dimension_numbers<[1], [0], [0], [1], [0, 0, 1, 1], [], []>} : vector<8x8xbf16>, vector<8x1xbf16>, vector<8x1xf32> -> vector<8x1xf32>
    %cst_39 = arith.constant 1.000000e-30 : f32
    %77 = vector.broadcast %cst_39 : f32 to vector<8x1xf32>
    %78 = arith.maximumf %76, %77 : vector<8x1xf32>
    %79 = tpu.reciprocal %78 {approx = true} : vector<8x1xf32> -> vector<8x1xf32>
    %80 = vector.broadcast %79 : vector<8x1xf32> to vector<8x128xf32>
    %81 = arith.mulf %74, %80 : vector<8x128xf32>
    %82 = vector.extract_strided_slice %79 {offsets = [2, 0], sizes = [1, 1], strides = [1, 1]} : vector<8x1xf32> to vector<1x1xf32>
    %83 = vector.broadcast %82 : vector<1x1xf32> to vector<8x1xf32>
    %84 = arith.mulf %69, %83 : vector<8x1xf32>
    %85 = vector.shape_cast %84 : vector<8x1xf32> to vector<8x1xf32>
    %86 = vector.broadcast %85 : vector<8x1xf32> to vector<8x128xf32>
    %c0_40 = arith.constant 0 : index
    %c0_41 = arith.constant 0 : index
    %c0_42 = arith.constant 0 : index
    %87 = vector.load %arg15[%c0_40, %c0_41, %c0_42] : memref<1x8x128xf32, #tpu.memory_space<vmem>>, vector<1x8x128xf32>
    %88 = vector.shape_cast %87 : vector<1x8x128xf32> to vector<8x128xf32>
    %89 = vector.shape_cast %86 : vector<8x128xf32> to vector<1x8x128xf32>
    tpu.vector_store %arg15[%c0_40, %c0_41, %c0_42], %89 {strides = array<i32>} : memref<1x8x128xf32, #tpu.memory_space<vmem>>, vector<1x8x128xf32>,
    %90 = arith.truncf %81 : vector<8x128xf32> to vector<8x128xbf16>
    %c0_43 = arith.constant 0 : index
    %c0_44 = arith.constant 0 : index
    %91 = vector.load %arg11[%c0_43, %c0_44] : memref<128x128xbf16, #tpu.memory_space<vmem>>, vector<128x128xbf16>
    %cst_45 = arith.constant dense<0.000000e+00> : vector<8x128xf32>
    %92 = tpu.matmul %90, %91, %cst_45 {dimension_numbers = #tpu.dot_dimension_numbers<[1], [0], [0], [1], [0, 0, 1, 1], [], []>} : vector<8x128xbf16>, vector<128x128xbf16>, vector<8x128xf32> -> vector<8x128xf32>
    %cst_46 = arith.constant 0.000000e+00 : f32
    %93 = vector.broadcast %cst_46 : f32 to vector<8x128xf32>
    %94 = arith.maximumf %92, %93 : vector<8x128xf32>
    %95 = arith.truncf %94 : vector<8x128xf32> to vector<8x128xbf16>
    %c0_47 = arith.constant 0 : index
    %c0_48 = arith.constant 0 : index
    %96 = vector.load %arg12[%c0_47, %c0_48] : memref<128x64xbf16, #tpu.memory_space<vmem>>, vector<128x64xbf16>
    %cst_49 = arith.constant dense<0.000000e+00> : vector<8x64xf32>
    %97 = tpu.matmul %95, %96, %cst_49 {dimension_numbers = #tpu.dot_dimension_numbers<[1], [0], [0], [1], [0, 0, 1, 1], [], []>} : vector<8x128xbf16>, vector<128x64xbf16>, vector<8x64xf32> -> vector<8x64xf32>
    %cst_50 = arith.constant 0.000000e+00 : f32
    %98 = vector.broadcast %cst_50 : f32 to vector<8x64xf32>
    %99 = arith.maximumf %97, %98 : vector<8x64xf32>
    %100 = arith.truncf %99 : vector<8x64xf32> to vector<8x64xbf16>
    %c0_51 = arith.constant 0 : index
    %c0_52 = arith.constant 0 : index
    %101 = vector.load %arg13[%c0_51, %c0_52] : memref<64x128xbf16, #tpu.memory_space<vmem>>, vector<64x128xbf16>
    %cst_53 = arith.constant dense<0.000000e+00> : vector<8x128xf32>
    %102 = tpu.matmul %100, %101, %cst_53 {dimension_numbers = #tpu.dot_dimension_numbers<[1], [0], [0], [1], [0, 0, 1, 1], [], []>} : vector<8x64xbf16>, vector<64x128xbf16>, vector<8x128xf32> -> vector<8x128xf32>
    %c0_54 = arith.constant 0 : index
    %c0_55 = arith.constant 0 : index
    %c0_56 = arith.constant 0 : index
    %103 = vector.load %arg14[%c0_54, %c0_55, %c0_56] : memref<1x8x128xf32, #tpu.memory_space<vmem>>, vector<1x8x128xf32>
    %104 = vector.shape_cast %103 : vector<1x8x128xf32> to vector<8x128xf32>
    %105 = vector.shape_cast %102 : vector<8x128xf32> to vector<1x8x128xf32>
    tpu.vector_store %arg14[%c0_54, %c0_55, %c0_56], %105 {strides = array<i32>} : memref<1x8x128xf32, #tpu.memory_space<vmem>>, vector<1x8x128xf32>,
    return
  }
  func.func @transform_0(%arg0: i32) -> (i32, i32, i32) {
    %c0_i32 = arith.constant 0 : i32
    %c0_i32_0 = arith.constant 0 : i32
    %c0_i32_1 = arith.constant 0 : i32
    return %arg0, %c0_i32, %c0_i32_0 : i32, i32, i32
  }
  func.func @transform_1(%arg0: i32) -> (i32, i32) {
    %c0_i32 = arith.constant 0 : i32
    %c0_i32_0 = arith.constant 0 : i32
    %c0_i32_1 = arith.constant 0 : i32
    return %c0_i32, %c0_i32_0 : i32, i32
  }
  func.func @transform_2(%arg0: i32) -> (i32, i32) {
    %c0_i32 = arith.constant 0 : i32
    %c0_i32_0 = arith.constant 0 : i32
    %c0_i32_1 = arith.constant 0 : i32
    return %c0_i32, %c0_i32_0 : i32, i32
  }
  func.func @transform_3(%arg0: i32) -> (i32, i32) {
    %c0_i32 = arith.constant 0 : i32
    %c0_i32_0 = arith.constant 0 : i32
    %c0_i32_1 = arith.constant 0 : i32
    return %c0_i32, %c0_i32_0 : i32, i32
  }
  func.func @transform_4(%arg0: i32) -> (i32, i32) {
    %c0_i32 = arith.constant 0 : i32
    %c0_i32_0 = arith.constant 0 : i32
    %c0_i32_1 = arith.constant 0 : i32
    return %c0_i32, %c0_i32_0 : i32, i32
  }
  func.func @transform_5(%arg0: i32) -> (i32, i32) {
    %c0_i32 = arith.constant 0 : i32
    %c0_i32_0 = arith.constant 0 : i32
    %c0_i32_1 = arith.constant 0 : i32
    return %c0_i32, %c0_i32_0 : i32, i32
  }
  func.func @transform_6(%arg0: i32) -> (i32, i32) {
    %c0_i32 = arith.constant 0 : i32
    %c0_i32_0 = arith.constant 0 : i32
    %c0_i32_1 = arith.constant 0 : i32
    return %c0_i32, %c0_i32_0 : i32, i32
  }
  func.func @transform_7(%arg0: i32) -> (i32, i32) {
    %c0_i32 = arith.constant 0 : i32
    %c0_i32_0 = arith.constant 0 : i32
    %c0_i32_1 = arith.constant 0 : i32
    return %c0_i32, %c0_i32_0 : i32, i32
  }
  func.func @transform_8(%arg0: i32) -> (i32, i32) {
    %c0_i32 = arith.constant 0 : i32
    %c0_i32_0 = arith.constant 0 : i32
    %c0_i32_1 = arith.constant 0 : i32
    return %c0_i32, %c0_i32_0 : i32, i32
  }
  func.func @transform_9(%arg0: i32) -> (i32, i32) {
    %c0_i32 = arith.constant 0 : i32
    %c0_i32_0 = arith.constant 0 : i32
    %c0_i32_1 = arith.constant 0 : i32
    return %c0_i32, %c0_i32_0 : i32, i32
  }
  func.func @transform_10(%arg0: i32) -> (i32, i32) {
    %c0_i32 = arith.constant 0 : i32
    %c0_i32_0 = arith.constant 0 : i32
    %c0_i32_1 = arith.constant 0 : i32
    return %c0_i32, %c0_i32_0 : i32, i32
  }
  func.func @transform_11(%arg0: i32) -> (i32, i32) {
    %c0_i32 = arith.constant 0 : i32
    %c0_i32_0 = arith.constant 0 : i32
    %c0_i32_1 = arith.constant 0 : i32
    return %c0_i32, %c0_i32_0 : i32, i32
  }
  func.func @transform_12(%arg0: i32) -> (i32, i32) {
    %c0_i32 = arith.constant 0 : i32
    %c0_i32_0 = arith.constant 0 : i32
    %c0_i32_1 = arith.constant 0 : i32
    return %c0_i32, %c0_i32_0 : i32, i32
  }
  func.func @transform_13(%arg0: i32) -> (i32, i32, i32) {
    %c0_i32 = arith.constant 0 : i32
    %c0_i32_0 = arith.constant 0 : i32
    %c0_i32_1 = arith.constant 0 : i32
    return %arg0, %c0_i32, %c0_i32_0 : i32, i32, i32
  }
  func.func @transform_14(%arg0: i32) -> (i32, i32, i32) {
    %c0_i32 = arith.constant 0 : i32
    %c0_i32_0 = arith.constant 0 : i32
    %c0_i32_1 = arith.constant 0 : i32
    return %arg0, %c0_i32, %c0_i32_0 : i32, i32, i32
  }
}

</mosaic_0001>

<bundles_post_ra>
// kernel: _final_forward_jit.1
= control target key start
LH: loop header
LB: loop body
LE: loop exit
PB: predicated region body
PF: predicated region fallthrough
CT: control target
= control target key end

     0   :  { %s2547_s29 = smov 0   ;;  %s3197_s0 = inlined_call_operand.vmem [shape: s32[2,128,1], index: 0, kind: input, shape index: {}]   ;;  %s3198_s1 = inlined_call_operand.vmem [shape: bf16[32,128], index: 1, kind: input, shape index: {}]   ;;  %s3199_s2 = inlined_call_operand.vmem [shape: bf16[128,1], index: 2, kind: input, shape index: {}]   ;;  %s3200_s3 = inlined_call_operand.vmem [shape: f32[128,1], index: 3, kind: input, shape index: {}]   ;;  %s3201_s4 = inlined_call_operand.vmem [shape: bf16[8,128], index: 4, kind: input, shape index: {}]   ;;  %s3202_s5 = inlined_call_operand.vmem [shape: f32[128,8], index: 5, kind: input, shape index: {}]   ;;  %s3203_s6 = inlined_call_operand.vmem [shape: bf16[128,1], index: 6, kind: input, shape index: {}]   ;;  %s3204_s7 = inlined_call_operand.vmem [shape: f32[8,1], index: 7, kind: input, shape index: {}]   ;;  %s3205_s8 = inlined_call_operand.vmem [shape: bf16[8,8], index: 8, kind: input, shape index: {}]   ;;  %s3206_s9 = inlined_call_operand.vmem [shape: f32[8,8], index: 9, kind: input, shape index: {}]   ;;  %s3207_s10 = inlined_call_operand.vmem [shape: bf16[128,128], index: 10, kind: input, shape index: {}]   ;;  %s3208_s11 = inlined_call_operand.vmem [shape: bf16[128,64], index: 11, kind: input, shape index: {}]   ;;  %s3209_s12 = inlined_call_operand.vmem [shape: bf16[64,128], index: 12, kind: input, shape index: {}]   ;;  %s3210_s13 = inlined_call_operand.vmem [shape: f32[2,8,128], index: 13, kind: output, shape index: {0}]   ;;  %s3211_s14 = inlined_call_operand.vmem [shape: f32[2,8,128], index: 14, kind: output, shape index: {1}]  }
   0x1 LB: > { %s2039_s30 = sadd.s32 4294967295, %s2467_s29   ;;  %p2043_p0 = scmp.ge.s32.totalorder %s2467_s29, 1  ;;  %s2467_s29 = sphi %s2547_s29, %s25_s29  }
   0x2   : > { %p415_p1 = scmp.lt.s32.totalorder %s2467_s29, 3 }
   0x4   : > { %p416_p2 = pnand %p2043_p0, %p415_p1 }
   0x6   : > { %419 = sbr.rel (%p416_p2) target bundleno = 2850 (0xb22), region = 72 }
   0xd   : > { %p464_p3 = scmp.lt.s32.totalorder %s2039_s30, 1  ;;  %v2469_v0 = vmov 0   ;;  %v2385_v7 = vld [vmem:[%s3198_s1] sm:$0xff]   ;;  %v2386_v8 = vld [vmem:[%s3198_s1 + $0x8] sm:$0xff]   ;;  %v3213_v13 = vmov 0.0   ;;  %v2389_v22 = vld [vmem:[%s3199_s2 + $0x10] sm:$0xff]   ;;  %v3212_v27 = vlaneseq }
   0xe   : > { %2384 = vset.pattern.permute.xlu1 %v2469_v0  ;;  %2383 = vset.pattern.permute.xlu0 %v2469_v0  ;;  %v2387_v20 = vld [vmem:[%s3199_s2] sm:$0xff]   ;;  %v2388_v21 = vld [vmem:[%s3199_s2 + $0x8] sm:$0xff]   ;;  %v2390_v23 = vld [vmem:[%s3199_s2 + $0x18] sm:$0xff]   ;;  %vm616_vm4 = vcmask 261120  }
   0xf   : > { %s3299_s30 = smov (!%p464_p3, %s2039_s30), 1  ;;  %2196 = vmatprep.subr.bf16.mxu0 %v2385_v7  ;;  %2216 = vmatprep.subr.bf16.mxu1 %v2387_v20  ;;  %v2391_v24 = vld [vmem:[%s3199_s2 + $0x20] sm:$0xff]   ;;  %v2392_v25 = vld [vmem:[%s3199_s2 + $0x28] sm:$0xff]   ;;  %v2393_v26 = vld [vmem:[%s3199_s2 + $0x30] sm:$0xff]   ;;  %v2608_v28 = vand.u32 127, %v3212_v27 }
  0x10   : > { %s2115_s15 = sshll.u32 %s3299_s30, 7  ;;  %2197 = vmatpush3.bf16.msra.mxu0 %v2385_v7  ;;  %2217 = vmatpush3.bf16.msra.mxu1 %v2387_v20  ;;  %s2046_s17 = sshll.u32 %s3299_s30, 3 }
  0x11   : > { %s2561_s18 = scalar_lea.vmem %s3197_s0, %s2115_s15  ;;  %2198 = vmatprep.subr.bf16.mxu0 %v2386_v8  ;;  %2218 = vmatprep.subr.bf16.mxu1 %v2388_v21  ;;  %s476_s20 = scalar_lea.vmem %s3211_s14, %s2046_s17 }
  0x12   : > { %v482_v1 = vld [vmem:[%s2561_s18 + $0x10] sm:$0xff]  ;;  %v480_v2 = vld [vmem:[%s2561_s18] sm:$0xff]  ;;  %v483_v3 = vld [vmem:[%s2561_s18 + $0x18] sm:$0xff] }
  0x13   : > { %503 = vperm.xlu1 %2384, %v482_v1   ;;  %497 = vperm.xlu0 %2383, %v480_v2   ;;  %v481_v4 = vld [vmem:[%s2561_s18 + $0x8] sm:$0xff]  ;;  %v484_v6 = vld [vmem:[%s2561_s18 + $0x20] sm:$0xff]  ;;  %v487_v9 = vld [vmem:[%s2561_s18 + $0x38] sm:$0xff] }
  0x14   : > { %v485_v5 = vld [vmem:[%s2561_s18 + $0x28] sm:$0xff]  ;;  %v486_v10 = vld [vmem:[%s2561_s18 + $0x30] sm:$0xff]  ;;  %v488_v12 = vld [vmem:[%s2561_s18 + $0x40] sm:$0xff]  ;;  %2199 = vmatpush3.bf16.msra.mxu0 %v2386_v8  ;;  %2219 = vmatpush3.bf16.msra.mxu1 %v2388_v21 }
  0x15   : > { %v489_v11 = vld [vmem:[%s2561_s18 + $0x48] sm:$0xff]  ;;  %2248 = vmatprep.subr.bf16.mxu0 %v3213_v13  ;;  %v491_v14 = vld [vmem:[%s2561_s18 + $0x58] sm:$0xff]  ;;  %v490_v15 = vld [vmem:[%s2561_s18 + $0x50] sm:$0xff]  ;;  %2220 = vmatprep.subr.bf16.mxu1 %v2389_v22 }
  0x16   : > { %v493_v16 = vld [vmem:[%s2561_s18 + $0x68] sm:$0xff]  ;;  %v492_v17 = vld [vmem:[%s2561_s18 + $0x60] sm:$0xff]  ;;  %v495_v18 = vld [vmem:[%s2561_s18 + $0x78] sm:$0xff] }
  0x17   : > { %506 = vperm.xlu1 %2384, %v483_v3   ;;  %500 = vperm.xlu0 %2383, %v481_v4   ;;  %v494_v19 = vld [vmem:[%s2561_s18 + $0x70] sm:$0xff] }
  0x18   : > { %2221 = vmatpush3.bf16.msra.mxu1 %v2389_v22 }
  0x19   : > { %2222 = vmatprep.subr.bf16.mxu1 %v2390_v23 }
  0x1b   : > { %512 = vperm.xlu1 %2384, %v485_v5   ;;  %509 = vperm.xlu0 %2383, %v484_v6   ;;  %v2394_v5 = vld [vmem:[%s3199_s2 + $0x38] sm:$0xff]  }
  0x1c   : > { %2223 = vmatpush3.bf16.msra.mxu1 %v2390_v23 }
  0x1d   : > { %2224 = vmatprep.subr.bf16.mxu1 %v2391_v24 }
  0x1f   : > { %518 = vperm.xlu1 %2384, %v487_v9   ;;  %515 = vperm.xlu0 %2383, %v486_v10  }
  0x20   : > { %2225 = vmatpush3.bf16.msra.mxu1 %v2391_v24 }
  0x21   : > { %2226 = vmatprep.subr.bf16.mxu1 %v2392_v25 }
  0x23   : > { %524 = vperm.xlu1 %2384, %v489_v11   ;;  %521 = vperm.xlu0 %2383, %v488_v12  }
  0x24   : > { %2227 = vmatpush3.bf16.msra.mxu1 %v2392_v25 }
  0x25   : > { %2228 = vmatprep.subr.bf16.mxu1 %v2393_v26 }
  0x27   : > { %530 = vperm.xlu1 %2384, %v491_v14   ;;  %527 = vperm.xlu0 %2383, %v490_v15  }
  0x28   : > { %2229 = vmatpush3.bf16.msra.mxu1 %v2393_v26 }
  0x29   : > { %2230 = vmatprep.subr.bf16.mxu1 %v2394_v5 }
  0x2b   : > { %536 = vperm.xlu1 %2384, %v493_v16   ;;  %533 = vperm.xlu0 %2383, %v492_v17  }
  0x2c   : > { %2231 = vmatpush3.bf16.msra.mxu1 %v2394_v5 }
  0x2d   : > { %2268 = vmatprep.subr.bf16.mxu1 %v3213_v13 }
  0x2f   : > { %542 = vperm.xlu1 %2384, %v495_v18   ;;  %539 = vperm.xlu0 %2383, %v494_v19  }
  0x92   : > { %v504_v29 = vpop.permute.xlu1 %503  ;;  %v498_v30 = vpop.permute.xlu0 %497 }
  0x93   : > { %vm546_vm0 = vcmp.eq.s32.totalorder %v2608_v28, %v504_v29  ;;  %vm544_vm1 = vcmp.eq.s32.totalorder %v2608_v28, %v498_v30 }
  0x94   : > { %v2050_v33 = vsel %vm546_vm0, 1.0, %v3213_v13  ;;  %v2048_v34 = vsel %vm544_vm1, 1.0, %v3213_v13 }
  0x96   : > { %v507_v31 = vpop.permute.xlu1 %506  ;;  %v501_v32 = vpop.permute.xlu0 %500 }
  0x97   : > { %vm547_vm2 = vcmp.eq.s32.totalorder %v2608_v28, %v507_v31  ;;  %vm545_vm3 = vcmp.eq.s32.totalorder %v2608_v28, %v501_v32  ;;  %v764_v32 = vld [vmem:[%s3200_s3 + $0x10] sm:$0xff] }
  0x98   : > { %v2051_v35 = vsel %vm547_vm2, 1.0, %v3213_v13  ;;  %v2049_v36 = vsel %vm545_vm3, 1.0, %v3213_v13 }
  0x99   : > { %v593_v37 = vpack.c.bf16 %v2051_v35, %v2050_v33  ;;  %v592_v38 = vpack.c.bf16 %v2049_v36, %v2048_v34  ;;  %v765_v34 = vld [vmem:[%s3200_s3 + $0x18] sm:$0xff] }
  0x9a   : > { %v513_v39 = vpop.permute.xlu1 %512  ;;  %v510_v40 = vpop.permute.xlu0 %509 }
  0x9b   : > { %vm549_vm5 = vcmp.eq.s32.totalorder %v2608_v28, %v513_v39  ;;  %vm548_vm6 = vcmp.eq.s32.totalorder %v2608_v28, %v510_v40  ;;  %2200 = vmatprep.mubr.msk.bf16.mxu0 %vm616_vm4, %v592_v38 }
  0x9c   : > { %v2053_v41 = vsel %vm549_vm5, 1.0, %v3213_v13  ;;  %v2052_v42 = vsel %vm548_vm6, 1.0, %v3213_v13  ;;  %2201 = vmatmul.mubr.msk.bf16.vlgmr.msra.gmra.mrb[0].mxu0 %vm616_vm4, %v593_v37  ;;  %v762_v37 = vld [vmem:[%s3200_s3] sm:$0xff] }
  0x9d   : > { %v594_v43 = vpack.c.bf16 %v2053_v41, %v2052_v42  ;;  %v763_v41 = vld [vmem:[%s3200_s3 + $0x8] sm:$0xff] }
  0x9e   : > { %v519_v44 = vpop.permute.xlu1 %518  ;;  %v516_v45 = vpop.permute.xlu0 %515 }
  0x9f   : > { %vm551_vm7 = vcmp.eq.s32.totalorder %v2608_v28, %v519_v44  ;;  %vm550_vm8 = vcmp.eq.s32.totalorder %v2608_v28, %v516_v45  ;;  %2204 = vmatprep.mubr.msk.bf16.mxu0 %vm616_vm4, %v594_v43  ;;  %v768_v43 = vld [vmem:[%s3200_s3 + $0x30] sm:$0xff] }
  0xa0   : > { %v2055_v46 = vsel %vm551_vm7, 1.0, %v3213_v13  ;;  %v2054_v47 = vsel %vm550_vm8, 1.0, %v3213_v13 }
  0xa1   : > { %v595_v48 = vpack.c.bf16 %v2055_v46, %v2054_v47  ;;  %v769_v46 = vld [vmem:[%s3200_s3 + $0x38] sm:$0xff] }
  0xa2   : > { %v525_v49 = vpop.permute.xlu1 %524  ;;  %v522_v50 = vpop.permute.xlu0 %521 }
  0xa3   : > { %vm553_vm9 = vcmp.eq.s32.totalorder %v2608_v28, %v525_v49  ;;  %vm552_vm10 = vcmp.eq.s32.totalorder %v2608_v28, %v522_v50  ;;  %v766_v49 = vld [vmem:[%s3200_s3 + $0x20] sm:$0xff] }
  0xa4   : > { %v2057_v51 = vsel %vm553_vm9, 1.0, %v3213_v13  ;;  %v2056_v52 = vsel %vm552_vm10, 1.0, %v3213_v13  ;;  %2205 = vmatmul.mubr.msk.bf16.gmra.mrb[4].mxu0 %vm616_vm4, %v595_v48 }
  0xa5   : > { %v596_v53 = vpack.c.bf16 %v2057_v51, %v2056_v52 }
  0xa6   : > { %v531_v54 = vpop.permute.xlu1 %530  ;;  %v528_v55 = vpop.permute.xlu0 %527 }
  0xa7   : > { %vm555_vm11 = vcmp.eq.s32.totalorder %v2608_v28, %v531_v54  ;;  %vm554_vm12 = vcmp.eq.s32.totalorder %v2608_v28, %v528_v55  ;;  %2208 = vmatprep.mubr.msk.bf16.mxu0 %vm616_vm4, %v596_v53  ;;  %v767_v53 = vld [vmem:[%s3200_s3 + $0x28] sm:$0xff]  ;;  %v772_v55 = vld [vmem:[%s3200_s3 + $0x50] sm:$0xff] }
  0xa8   : > { %v2059_v56 = vsel %vm555_vm11, 1.0, %v3213_v13  ;;  %v2058_v57 = vsel %vm554_vm12, 1.0, %v3213_v13 }
  0xa9   : > { %v597_v58 = vpack.c.bf16 %v2059_v56, %v2058_v57 }
  0xaa   : > { %v537_v59 = vpop.permute.xlu1 %536  ;;  %v534_v60 = vpop.permute.xlu0 %533 }
  0xab   : > { %vm557_vm13 = vcmp.eq.s32.totalorder %v2608_v28, %v537_v59  ;;  %vm556_vm14 = vcmp.eq.s32.totalorder %v2608_v28, %v534_v60 }
  0xac   : > { %v2061_v61 = vsel %vm557_vm13, 1.0, %v3213_v13  ;;  %v2060_v62 = vsel %vm556_vm14, 1.0, %v3213_v13  ;;  %2209 = vmatmul.mubr.msk.bf16.gmra.mrb[8].mxu0 %vm616_vm4, %v597_v58  ;;  %v773_v58 = vld [vmem:[%s3200_s3 + $0x58] sm:$0xff] }
  0xad   : > { %v598_v63 = vpack.c.bf16 %v2061_v61, %v2060_v62  ;;  %v770_v61 = vld [vmem:[%s3200_s3 + $0x40] sm:$0xff] }
  0xae   : > { %v543_v0 = vpop.permute.xlu1 %542  ;;  %v540_v1 = vpop.permute.xlu0 %539 }
  0xaf   : > { %vm559_vm15 = vcmp.eq.s32.totalorder %v2608_v28, %v543_v0  ;;  %vm558_vm0 = vcmp.eq.s32.totalorder %v2608_v28, %v540_v1  ;;  %2212 = vmatprep.mubr.msk.bf16.mxu0 %vm616_vm4, %v598_v63  ;;  %v771_v1 = vld [vmem:[%s3200_s3 + $0x48] sm:$0xff] }
  0xb0   : > { %v2063_v2 = vsel %vm559_vm15, 1.0, %v3213_v13  ;;  %v2062_v3 = vsel %vm558_vm0, 1.0, %v3213_v13 }
  0xb1   : > { %v599_v4 = vpack.c.bf16 %v2063_v2, %v2062_v3 }
  0xb4   : > { %2213 = vmatmul.mubr.msk.bf16.gmra.mrb[12].mxu0 %vm616_vm4, %v599_v4  ;;  %v774_v4 = vld [vmem:[%s3200_s3 + $0x60] sm:$0xff] }
 0x16f   : > { %v2654_v6 = vpop.f32.mrb[0].mxu0 }
 0x170   : > { %v2656_v7 = vpop.f32.mrb[1].mxu0 }
 0x171   : > { %v2658_v8 = vpop.f32.mrb[2].mxu0 }
 0x172   : > { %v739_v9 = vpack.c.bf16 %v2658_v8, %v2654_v6  ;;  %v2662_v10 = vpop.f32.mrb[3].mxu0 }
 0x173   : > { %v738_v11 = vpack.c.bf16 %v2662_v10, %v2656_v7 }
 0x175   : > { %2232 = vmatprep.mubr.bf16.mxu1 %v738_v11  ;;  %v775_v11 = vld [vmem:[%s3200_s3 + $0x68] sm:$0xff] }
 0x176   : > { %2233 = vmatmul.mubr.bf16.vlgmr.msra.gmra.mrb[0].mxu1 %v739_v9 }
 0x177   : > { %v2666_v12 = vpop.f32.mrb[4].mxu0 }
 0x178   : > { %3233 = vst [vmem:[#allocation2_spill] sm:$0xff] %v2666_v12  ;;  %v2668_v14 = vpop.f32.mrb[5].mxu0 }
 0x179   : > { %v2670_v15 = vpop.f32.mrb[6].mxu0 }
 0x17a   : > { %3234 = vst [vmem:[#allocation3_spill] sm:$0xff] %v2670_v15  ;;  %v741_v16 = vpack.c.bf16 %v2670_v15, %v2666_v12  ;;  %v2674_v17 = vpop.f32.mrb[7].mxu0 }
 0x17b   : > { %3235 = vst [vmem:[#allocation4_spill] sm:$0xff] %v2674_v17  ;;  %v740_v18 = vpack.c.bf16 %v2674_v17, %v2668_v14 }
 0x17d   : > { %2236 = vmatprep.mubr.bf16.mxu1 %v740_v18 }
 0x17e   : > { %2237 = vmatmul.mubr.bf16.gmra.mrb[4].mxu1 %v741_v16 }
 0x17f   : > { %v2678_v19 = vpop.f32.mrb[8].mxu0 }
 0x180   : > { %3236 = vst [vmem:[#allocation5_spill] sm:$0xff] %v2678_v19  ;;  %v2680_v20 = vpop.f32.mrb[9].mxu0 }
 0x181   : > { %3237 = vst [vmem:[#allocation6_spill] sm:$0xff] %v2680_v20  ;;  %v2682_v21 = vpop.f32.mrb[10].mxu0 }
 0x182   : > { %3238 = vst [vmem:[#allocation7_spill] sm:$0xff] %v2682_v21  ;;  %v743_v22 = vpack.c.bf16 %v2682_v21, %v2678_v19  ;;  %v2686_v23 = vpop.f32.mrb[11].mxu0 }
 0x183   : > { %3239 = vst [vmem:[#allocation8_spill] sm:$0xff] %v2686_v23  ;;  %v742_v24 = vpack.c.bf16 %v2686_v23, %v2680_v20 }
 0x185   : > { %2240 = vmatprep.mubr.bf16.mxu1 %v742_v24 }
 0x186   : > { %2241 = vmatmul.mubr.bf16.gmra.mrb[8].mxu1 %v743_v22  ;;  %v776_v22 = vld [vmem:[%s3200_s3 + $0x70] sm:$0xff] }
 0x187   : > { %v2690_v25 = vpop.f32.mrb[12].mxu0 }
 0x188   : > { %3240 = vst [vmem:[#allocation9_spill] sm:$0xff] %v2690_v25  ;;  %v2692_v26 = vpop.f32.mrb[13].mxu0 }
 0x189   : > { %3241 = vst [vmem:[#allocation10_spill] sm:$0xff] %v2692_v26  ;;  %v2694_v28 = vpop.f32.mrb[14].mxu0 }
 0x18a   : > { %3242 = vst [vmem:[#allocation11_spill] sm:$0xff] %v2694_v28  ;;  %v745_v29 = vpack.c.bf16 %v2694_v28, %v2690_v25  ;;  %v2698_v30 = vpop.f32.mrb[15].mxu0 }
 0x18b   : > { %3243 = vst [vmem:[#allocation12_spill] sm:$0xff] %v2698_v30  ;;  %v744_v31 = vpack.c.bf16 %v2698_v30, %v2692_v26 }
 0x18d   : > { %2244 = vmatprep.mubr.bf16.mxu1 %v744_v31  ;;  %v777_v31 = vld [vmem:[%s3200_s3 + $0x78] sm:$0xff] }
 0x18e   : > { %2245 = vmatmul.mubr.bf16.gmra.mrb[12].mxu1 %v745_v29 }
 0x249   : > { %v2234_v33 = vpop.f32.mrb[0].mxu1 }
 0x24a   : > { %v2708_v35 = vadd.f32 %v2234_v33, %v764_v32  ;;  %v860_v36 = vpop.f32.mrb[1].mxu1 }
 0x24b   : > { %v2235_v38 = vpop.f32.mrb[2].mxu1  ;;  %v2719_v42 = vadd.f32 %v860_v36, %v762_v37 }
 0x24c   : > { %v2713_v39 = vadd.f32 %v2235_v38, %v765_v34  ;;  %967 = vperm.xlu0 %2383, %v2708_v35   ;;  %v863_v40 = vpop.f32.mrb[3].mxu1 }
 0x24d   : > { %v2725_v44 = vadd.f32 %v863_v40, %v763_v41 }
 0x24e   : > { %972 = vperm.xlu1 %2384, %v2713_v39  }
 0x250   : > { %957 = vperm.xlu0 %2383, %v2719_v42  }
 0x251   : > { %v2238_v45 = vpop.f32.mrb[4].mxu1 }
 0x252   : > { %v2731_v47 = vadd.f32 %v2238_v45, %v768_v43  ;;  %962 = vperm.xlu1 %2384, %v2725_v44   ;;  %v876_v48 = vpop.f32.mrb[5].mxu1  ;;  %v2801_v45 = vld [vmem:[%s3202_s5 + $0x10] sm:$0xff] }
 0x253   : > { %v2239_v50 = vpop.f32.mrb[6].mxu1  ;;  %v2743_v54 = vadd.f32 %v876_v48, %v766_v49  ;;  %v2811_v48 = vld [vmem:[%s3202_s5] sm:$0xff]  ;;  %v2816_v49 = vld [vmem:[%s3202_s5 + $0x8] sm:$0xff]  ;;  %vm3221_vm1 = vcmp.gt.f32.partialorder %v2801_v45, 0.5 }
 0x254   : > { %v2737_v51 = vadd.f32 %v2239_v50, %v769_v46  ;;  %987 = vperm.xlu0 %2383, %v2731_v47   ;;  %v879_v52 = vpop.f32.mrb[7].mxu1  ;;  %v2806_v46 = vld [vmem:[%s3202_s5 + $0x18] sm:$0xff]  ;;  %vm3224_vm4 = vcmp.gt.f32.partialorder %v2811_v48, 0.5  ;;  %vm940_vm5 = vcmp.gt.f32.partialorder %v2816_v49, 0.5 }
 0x255   : > { %v2749_v56 = vadd.f32 %v879_v52, %v767_v53  ;;  %v2821_v52 = vld [vmem:[%s3202_s5 + $0x30] sm:$0xff]  ;;  %v2826_v53 = vld [vmem:[%s3202_s5 + $0x38] sm:$0xff]  ;;  %vm3219_vm3 = vcmp.gt.f32.partialorder %v2806_v46, 0.5 }
 0x256   : > { %992 = vperm.xlu1 %2384, %v2737_v51   ;;  %vm3223_vm6 = vcmp.gt.f32.partialorder %v2821_v52, 0.5  ;;  %vm3228_vm7 = vcmp.gt.f32.partialorder %v2826_v53, 0.5 }
 0x258   : > { %977 = vperm.xlu0 %2383, %v2743_v54  }
 0x259   : > { %v2242_v57 = vpop.f32.mrb[8].mxu1 }
 0x25a   : > { %v2755_v59 = vadd.f32 %v2242_v57, %v772_v55  ;;  %982 = vperm.xlu1 %2384, %v2749_v56   ;;  %v892_v60 = vpop.f32.mrb[9].mxu1  ;;  %v2831_v55 = vld [vmem:[%s3202_s5 + $0x20] sm:$0xff]  ;;  %v2836_v57 = vld [vmem:[%s3202_s5 + $0x28] sm:$0xff] }
 0x25b   : > { %v2243_v62 = vpop.f32.mrb[10].mxu1  ;;  %v2767_v2 = vadd.f32 %v892_v60, %v770_v61  ;;  %v2846_v61 = vld [vmem:[%s3202_s5 + $0x58] sm:$0xff]  ;;  %vm943_vm8 = vcmp.gt.f32.partialorder %v2831_v55, 0.5  ;;  %vm3218_vm9 = vcmp.gt.f32.partialorder %v2836_v57, 0.5 }
 0x25c   : > { %v2761_v63 = vadd.f32 %v2243_v62, %v773_v58  ;;  %1007 = vperm.xlu0 %2383, %v2755_v59   ;;  %v895_v0 = vpop.f32.mrb[11].mxu1  ;;  %v2841_v58 = vld [vmem:[%s3202_s5 + $0x50] sm:$0xff]  ;;  %v2852_v62 = vld [vmem:[%s3202_s5 + $0x40] sm:$0xff]  ;;  %vm950_vm11 = vcmp.gt.f32.partialorder %v2846_v61, 0.5  ;;  %v3281_v61 = vmov 0.0  }
 0x25d   : > { %v2770_v3 = vadd.f32 %v895_v0, %v771_v1  ;;  %v2857_v0 = vld [vmem:[%s3202_s5 + $0x48] sm:$0xff]  ;;  %v2862_v1 = vld [vmem:[%s3202_s5 + $0x60] sm:$0xff]  ;;  %vm949_vm10 = vcmp.gt.f32.partialorder %v2841_v58, 0.5  ;;  %vm947_vm12 = vcmp.gt.f32.partialorder %v2852_v62, 0.5 }
 0x25e   : > { %1012 = vperm.xlu1 %2384, %v2761_v63   ;;  %vm3225_vm13 = vcmp.gt.f32.partialorder %v2857_v0, 0.5  ;;  %vm951_vm14 = vcmp.gt.f32.partialorder %v2862_v1, 0.5 }
 0x260   : > { %997 = vperm.xlu0 %2383, %v2767_v2  }
 0x261   : > { %v2246_v5 = vpop.f32.mrb[12].mxu1 }
 0x262   : > { %1002 = vperm.xlu1 %2384, %v2770_v3   ;;  %v908_v9 = vpop.f32.mrb[13].mxu1  ;;  %v2791_v32 = vadd.f32 %v2246_v5, %v776_v22  ;;  %v2870_v5 = vld [vmem:[%s3202_s5 + $0x68] sm:$0xff] }
 0x263   : > { %v2780_v16 = vadd.f32 %v908_v9, %v774_v4  ;;  %v2247_v18 = vpop.f32.mrb[14].mxu1  ;;  %v2875_v9 = vld [vmem:[%s3202_s5 + $0x70] sm:$0xff]  ;;  %vm952_vm15 = vcmp.gt.f32.partialorder %v2870_v5, 0.5 }
 0x264   : > { %v911_v24 = vpop.f32.mrb[15].mxu1  ;;  %v2794_v33 = vadd.f32 %v2247_v18, %v777_v31  ;;  %vm953_vm0 = vcmp.gt.f32.partialorder %v2875_v9, 0.5 }
 0x265   : > { %v2785_v29 = vadd.f32 %v911_v24, %v775_v11  ;;  %1017 = vperm.xlu0 %2383, %v2780_v16   ;;  %v2880_v11 = vld [vmem:[%s3202_s5 + $0x78] sm:$0xff] }
 0x266   : > { %vm954_vm2 = vcmp.gt.f32.partialorder %v2880_v11, 0.5 }
 0x267   : > { %1022 = vperm.xlu1 %2384, %v2785_v29  }
 0x269   : > { %1027 = vperm.xlu0 %2383, %v2791_v32  }
 0x26b   : > { %1032 = vperm.xlu1 %2384, %v2794_v33  }
 0x2cb   : > { %v968_v34 = vpop.permute.xlu0 %967 }
 0x2cc   : > { %v1037_v22 = vsel %vm3221_vm1, %v968_v34, -1e+30 }
 0x2cd   : > { %v973_v36 = vpop.permute.xlu1 %972 }
 0x2ce   : > { %v1038_v24 = vsel %vm3219_vm3, %v973_v36, -1e+30 }
 0x2cf   : > { %v958_v37 = vpop.permute.xlu0 %957 }
 0x2d0   : > { %v1035_v13 = vsel %vm3224_vm4, %v958_v37, -1e+30 }
 0x2d1   : > { %v963_v38 = vpop.permute.xlu1 %962 }
 0x2d2   : > { %v1036_v28 = vsel %vm940_vm5, %v963_v38, -1e+30 }
 0x2d3   : > { %v988_v40 = vpop.permute.xlu0 %987 }
 0x2d4   : > { %v1041_v25 = vsel %vm3223_vm6, %v988_v40, -1e+30 }
 0x2d5   : > { %v993_v41 = vpop.permute.xlu1 %992 }
 0x2d6   : > { %v1042_v30 = vsel %vm3228_vm7, %v993_v41, -1e+30 }
 0x2d7   : > { %v978_v43 = vpop.permute.xlu0 %977 }
 0x2d8   : > { %v1039_v34 = vsel %vm943_vm8, %v978_v43, -1e+30 }
 0x2d9   : > { %v983_v50 = vpop.permute.xlu1 %982 }
 0x2da   : > { %v1040_v31 = vsel %vm3218_vm9, %v983_v50, -1e+30  ;;  %vm3244_vm9 = vcmask 64512  }
 0x2db   : > { %v1008_v60 = vpop.permute.xlu0 %1007  ;;  %v1054_v50 = vsel %vm3244_vm9, %v1037_v22, -inf  ;;  %vm3245_vm3 = vmmov %vm3244_vm9 }
 0x2dc   : > { %v1055_v26 = vsel %vm3245_vm3, %v1038_v24, -inf  ;;  %vm3246_vm1 = vmmov %vm3245_vm3  ;;  %v1045_v38 = vsel %vm949_vm10, %v1008_v60, -1e+30 }
 0x2dd   : > { %v1013_v4 = vpop.permute.xlu1 %1012  ;;  %v1058_v37 = vsel %vm3246_vm1, %v1040_v31, -inf  ;;  %vm3247_vm6 = vmmov %vm3246_vm1 }
 0x2de   : > { %v1052_v40 = vsel %vm3247_vm6, %v1035_v13, -inf  ;;  %vm3248_vm4 = vmmov %vm3246_vm1  ;;  %v1046_v43 = vsel %vm950_vm11, %v1013_v4, -1e+30 }
 0x2df   : > { %v998_v18 = vpop.permute.xlu0 %997  ;;  %v1060_v41 = vsel %vm3248_vm4, %v1041_v25, -inf  ;;  %vm3250_vm9 = vmmov %vm3246_vm1 }
 0x2e0   : > { %v1062_v24 = vsel %vm3250_vm9, %v1042_v30, -inf  ;;  %vm3251_vm3 = vmmov %vm3246_vm1  ;;  %v1061_v20 = vmax.f32 %v1054_v50, %v1060_v41 }
 0x2e1   : > { %v1003_v27 = vpop.permute.xlu1 %1002  ;;  %v1056_v31 = vsel %vm3251_vm3, %v1039_v34, -inf  ;;  %vm3252_vm7 = vmmov %vm3246_vm1  ;;  %v1063_v15 = vmax.f32 %v1055_v26, %v1062_v24 }
 0x2e2   : > { %v1044_v36 = vsel %vm3225_vm13, %v1003_v27, -1e+30  ;;  %v1043_v27 = vsel %vm947_vm12, %v998_v18, -1e+30  ;;  %vm3249_vm13 = vmmov %vm3246_vm1  ;;  %v1068_v13 = vsel %vm3252_vm7, %v1045_v38, -inf }
 0x2e3   : > { %v1053_v22 = vsel %vm3249_vm13, %v1036_v28, -inf  ;;  %v1066_v19 = vsel %vm3246_vm1, %v1044_v36, -inf  ;;  %vm3253_vm4 = vmmov %vm3246_vm1  ;;  %v1057_v36 = vmax.f32 %v1052_v40, %v1056_v31  ;;  %v1069_v38 = vmax.f32 %v1061_v20, %v1068_v13 }
 0x2e4   : > { %v1018_v21 = vpop.permute.xlu0 %1017  ;;  %v1059_v23 = vmax.f32 %v1053_v22, %v1058_v37  ;;  %v1070_v18 = vsel %vm3253_vm4, %v1046_v43, -inf  ;;  %vm3254_vm6 = vmmov %vm3246_vm1 }
 0x2e5   : > { %v1047_v25 = vsel %vm951_vm14, %v1018_v21, -1e+30  ;;  %v1064_v28 = vsel %vm3254_vm6, %v1043_v27, -inf  ;;  %vm3255_vm13 = vmmov %vm3246_vm1  ;;  %v1071_v50 = vmax.f32 %v1063_v15, %v1070_v18 }
 0x2e6   : > { %v1023_v60 = vpop.permute.xlu1 %1022  ;;  %v1067_v12 = vmax.f32 %v1059_v23, %v1066_v19  ;;  %vm3256_vm7 = vmmov %vm3246_vm1  ;;  %v1065_v41 = vmax.f32 %v1057_v36, %v1064_v28 }
 0x2e7   : > { %v1048_v4 = vsel %vm952_vm15, %v1023_v60, -1e+30  ;;  %v1072_v21 = vsel %vm3256_vm7, %v1047_v25, -inf  ;;  %vm3257_vm9 = vmmov %vm3246_vm1 }
 0x2e8   : > { %v1074_v30 = vsel %vm3255_vm13, %v1048_v4, -inf  ;;  %v1028_v34 = vpop.permute.xlu0 %1027  ;;  %vm3258_vm3 = vmmov %vm3246_vm1  ;;  %v1073_v26 = vmax.f32 %v1065_v41, %v1072_v21  ;;  %vm3259_vm1 = vcmp.gt.f32.partialorder %v2811_v48, 0.5  ;;  %vm3262_vm13 = vcmp.gt.f32.partialorder %v2801_v45, 0.5 }
 0x2e9   : > { %v1049_v37 = vsel %vm953_vm0, %v1028_v34, -1e+30  ;;  %v1075_v43 = vmax.f32 %v1067_v12, %v1074_v30  ;;  %vm3260_vm4 = vmmov %vm3258_vm3 }
 0x2ea   : > { %v1076_v22 = vsel %vm3257_vm9, %v1049_v37, -inf  ;;  %v1033_v60 = vpop.permute.xlu1 %1032  ;;  %vm3261_vm6 = vmmov %vm3258_vm3 }
 0x2eb   : > { %v1050_v27 = vsel %vm954_vm2, %v1033_v60, -1e+30  ;;  %v1077_v40 = vmax.f32 %v1069_v38, %v1076_v22  ;;  %v1080_v23 = vmax.f32 %v1073_v26, %v1075_v43  ;;  %vm3263_vm7 = vmmov %vm3258_vm3 }
 0x2ec   : > { %v1078_v4 = vsel %vm3258_vm3, %v1050_v27, -inf  ;;  %vm3264_vm9 = vmmov %vm3258_vm3  ;;  %vm3266_vm3 = vcmp.gt.f32.partialorder %v2806_v46, 0.5 }
 0x2ed   : > { %v1079_v19 = vmax.f32 %v1071_v50, %v1078_v4 }
 0x2ef   : > { %v1081_v24 = vmax.f32 %v1077_v40, %v1079_v19 }
 0x2f1   : > { %v1082_v31 = vmax.f32 %v1080_v23, %v1081_v24 }
 0x2f3   : > { %v1083_v20 = vrot.slane %v1082_v31, 4 }
 0x2f5   : > { %v1084_v13 = vmax.f32 %v1082_v31, %v1083_v20 }
 0x2f7   : > { %v1085_v25 = vrot.slane %v1084_v13, 2 }
 0x2f9   : > { %v1086_v34 = vmax.f32 %v1084_v13, %v1085_v25 }
 0x2fb   : > { %v1087_v37 = vrot.slane %v1086_v34, 1 }
 0x2fd   : > { %v1088_v17 = vmax.f32 %v1086_v34, %v1087_v37 }
 0x2ff   : > { %v1090_v12 = vsel %vm940_vm5, %v1088_v17, -1e+30  ;;  %v1089_v15 = vsel %vm3259_vm1, %v1088_v17, -1e+30  ;;  %v1093_v30 = vsel %vm943_vm8, %v1088_v17, -1e+30  ;;  %vm3267_vm1 = vmmov %vm3260_vm4 }
 0x300   : > { %v1108_v18 = vsel %vm3260_vm4, %v1090_v12, -inf  ;;  %v1105_v28 = vsel %vm3261_vm6, %v1089_v15, -inf  ;;  %v1091_v36 = vsel %vm3262_vm13, %v1088_v17, -1e+30  ;;  %v1117_v38 = vsel %vm3263_vm7, %v1093_v30, -inf  ;;  %vm3268_vm4 = vmmov %vm3267_vm1 }
 0x301   : > { %1109 = vmax.xlane.f32.xlu1 %v1108_v18  ;;  %1106 = vmax.xlane.f32.xlu0 %v1105_v28  ;;  %v1111_v49 = vsel %vm3264_vm9, %v1091_v36, -inf  ;;  %vm3265_vm5 = vcmp.gt.f32.partialorder %v2821_v52, 0.5  ;;  %v1092_v21 = vsel %vm3266_vm3, %v1088_v17, -1e+30  ;;  %v1097_v45 = vsel %vm947_vm12, %v1088_v17, -1e+30  ;;  %vm3270_vm6 = vmmov %vm3267_vm1 }
 0x302   : > { %v1095_v48 = vsel %vm3265_vm5, %v1088_v17, -1e+30  ;;  %v1114_v55 = vsel %vm3268_vm4, %v1092_v21, -inf  ;;  %vm3269_vm8 = vcmp.gt.f32.partialorder %v2836_v57, 0.5  ;;  %v1129_v50 = vsel %vm3270_vm6, %v1097_v45, -inf  ;;  %vm3271_vm13 = vmmov %vm3267_vm1 }
 0x303   : > { %v1123_v22 = vsel %vm3267_vm1, %v1095_v48, -inf  ;;  %v1094_v60 = vsel %vm3269_vm8, %v1088_v17, -1e+30  ;;  %v1099_v46 = vsel %vm949_vm10, %v1088_v17, -1e+30  ;;  %vm3272_vm7 = vcmp.gt.f32.partialorder %v2826_v53, 0.5  ;;  %vm3273_vm9 = vmmov %vm3267_vm1 }
 0x304   : > { %v1120_v52 = vsel %vm3271_vm13, %v1094_v60, -inf  ;;  %v1096_v41 = vsel %vm3272_vm7, %v1088_v17, -1e+30  ;;  %v1135_v43 = vsel %vm3273_vm9, %v1099_v46, -inf  ;;  %vm3274_vm5 = vmmov %vm3267_vm1  ;;  %v1101_v57 = vsel %vm951_vm14, %v1088_v17, -1e+30 }
 0x305   : > { %1118 = vmax.xlane.f32.xlu1 %v1117_v38  ;;  %1112 = vmax.xlane.f32.xlu0 %v1111_v49  ;;  %v1126_v62 = vsel %vm3274_vm5, %v1096_v41, -inf  ;;  %vm3275_vm12 = vcmp.gt.f32.partialorder %v2857_v0, 0.5  ;;  %vm3276_vm3 = vmmov %vm3267_vm1  ;;  %v1103_v53 = vsel %vm953_vm0, %v1088_v17, -1e+30  ;;  %v1100_v26 = vsel %vm950_vm11, %v1088_v17, -1e+30 }
 0x306   : > { %v1098_v27 = vsel %vm3275_vm12, %v1088_v17, -1e+30  ;;  %v1141_v4 = vsel %vm3276_vm3, %v1101_v57, -inf  ;;  %vm3277_vm10 = vmmov %vm3267_vm1  ;;  %v1102_v0 = vsel %vm952_vm15, %v1088_v17, -1e+30  ;;  %vm2471_vm0 = vmmov 0  }
 0x307   : > { %v1132_v58 = vsel %vm3267_vm1, %v1098_v27, -inf  ;;  %v1147_v40 = vsel %vm3277_vm10, %v1103_v53, -inf  ;;  %vm3278_vm4 = vmmov %vm3267_vm1  ;;  %v1104_v23 = vsel %vm954_vm2, %v1088_v17, -1e+30  ;;  %2284 = vmatprep.mubr.msk.bf16.mxu1 %vm2471_vm0, %v3281_v61  ;;  %2264 = vmatprep.mubr.msk.bf16.mxu0 %vm2471_vm0, %v3281_v61  ;;  %vm1558_vm6 = vcmask 1043456  }
 0x308   : > { %v1138_v1 = vsel %vm3278_vm4, %v1100_v26, -inf  ;;  %vm3279_vm14 = vmmov %vm3267_vm1  ;;  %vm1910_vm9 = vcmask 523264  }
 0x309   : > { %1124 = vmax.xlane.f32.xlu1 %v1123_v22  ;;  %1115 = vmax.xlane.f32.xlu0 %v1114_v55  ;;  %v1144_v19 = vsel %vm3279_vm14, %v1102_v0, -inf  ;;  %vm3280_vm8 = vmmov %vm3267_vm1 }
 0x30a   : > { %v1150_v9 = vsel %vm3280_vm8, %v1104_v23, -inf  ;;  %vm3293_vm11 = vmmov %vm3267_vm1 }
 0x30b   : > { %vm3294_vm15 = vmmov %vm3267_vm1 }
 0x30c   : > { %vm3295_vm13 = vmmov %vm3267_vm1 }
 0x30d   : > { %1130 = vmax.xlane.f32.xlu1 %v1129_v50  ;;  %1121 = vmax.xlane.f32.xlu0 %v1120_v52  ;;  %vm3296_vm7 = vmmov %vm3267_vm1 }
 0x311   : > { %1136 = vmax.xlane.f32.xlu1 %v1135_v43  ;;  %1127 = vmax.xlane.f32.xlu0 %v1126_v62 }
 0x315   : > { %1142 = vmax.xlane.f32.xlu1 %v1141_v4  ;;  %1133 = vmax.xlane.f32.xlu0 %v1132_v58 }
 0x319   : > { %1148 = vmax.xlane.f32.xlu1 %v1147_v40  ;;  %1139 = vmax.xlane.f32.xlu0 %v1138_v1 }
 0x31d   : > { %1145 = vmax.xlane.f32.xlu0 %v1144_v19 }
 0x321   : > { %1151 = vmax.xlane.f32.xlu0 %v1150_v9 }
 0x38e   : > { %v1110_v24 = vpop.xlane.xlu1 %1109  ;;  %v1107_v31 = vpop.xlane.xlu0 %1106 }
 0x38f   : > { %v1154_v5 = vsub.f32 %v2725_v44, %v1110_v24  ;;  %v1153_v20 = vsub.f32 %v2719_v42, %v1107_v31 }
 0x391   : > { %v1170_v13 = vmin.f32 %v1154_v5, 0.0  ;;  %v1169_v25 = vmin.f32 %v1153_v20, 0.0 }
 0x392   : > { %v1119_v11 = vpop.xlane.xlu1 %1118  ;;  %v1113_v17 = vpop.xlane.xlu0 %1112 }
 0x393   : > { %v1187_v34 = vmul.f32 1.442695, %v1170_v13  ;;  %v1185_v37 = vmul.f32 1.442695, %v1169_v25  ;;  %v1157_v12 = vsub.f32 %v2743_v54, %v1119_v11  ;;  %v1155_v15 = vsub.f32 %v2708_v35, %v1113_v17 }
 0x395   : > { %2423 = vpow2.f32 %v1187_v34  ;;  %v1173_v18 = vmin.f32 %v1157_v12, 0.0  ;;  %v1171_v28 = vmin.f32 %v1155_v15, 0.0 }
 0x396   : > { %2425 = vpow2.f32 %v1185_v37  ;;  %v1125_v30 = vpop.xlane.xlu1 %1124  ;;  %v1116_v36 = vpop.xlane.xlu0 %1115 }
 0x397   : > { %v1193_v38 = vmul.f32 1.442695, %v1173_v18  ;;  %v1189_v44 = vmul.f32 1.442695, %v1171_v28  ;;  %v1159_v42 = vsub.f32 %v2731_v47, %v1125_v30  ;;  %v1156_v49 = vsub.f32 %v2713_v39, %v1116_v36 }
 0x399   : > { %2427 = vpow2.f32 %v1193_v38  ;;  %v1175_v48 = vmin.f32 %v1159_v42, 0.0  ;;  %v1172_v21 = vmin.f32 %v1156_v49, 0.0 }
 0x39a   : > { %2429 = vpow2.f32 %v1189_v44  ;;  %v1131_v22 = vpop.xlane.xlu1 %1130  ;;  %v1122_v54 = vpop.xlane.xlu0 %1121 }
 0x39b   : > { %v1197_v55 = vmul.f32 1.442695, %v1175_v48  ;;  %v1191_v35 = vmul.f32 1.442695, %v1172_v21  ;;  %v1161_v45 = vsub.f32 %v2767_v2, %v1131_v22  ;;  %v1158_v60 = vsub.f32 %v2749_v56, %v1122_v54 }
 0x39d   : > { %2431 = vpow2.f32 %v1197_v55  ;;  %v1177_v50 = vmin.f32 %v1161_v45, 0.0  ;;  %v1174_v52 = vmin.f32 %v1158_v60, 0.0 }
 0x39e   : > { %2433 = vpow2.f32 %v1191_v35  ;;  %v1137_v46 = vpop.xlane.xlu1 %1136  ;;  %v1128_v47 = vpop.xlane.xlu0 %1127 }
 0x39f   : > { %v2424_v41 = vpop.eup %2423  ;;  %v1201_v39 = vmul.f32 1.442695, %v1177_v50  ;;  %v1195_v43 = vmul.f32 1.442695, %v1174_v52  ;;  %v1163_v62 = vsub.f32 %v2755_v59, %v1137_v46  ;;  %v1160_v57 = vsub.f32 %v2737_v51, %v1128_v47  ;;  %v1217_v46 = vld [vmem:[%s3201_s4] sm:$0xf] }
 0x3a0   : > { %v2426_v27 = vpop.eup %2425  ;;  %1225 = vperm.xlu0 %2383, %v2424_v41  }
 0x3a1   : > { %2435 = vpow2.f32 %v1201_v39  ;;  %v1179_v4 = vmin.f32 %v1163_v62, 0.0  ;;  %v1176_v2 = vmin.f32 %v1160_v57, 0.0  ;;  %1220 = vperm.xlu1 %2384, %v2426_v27   ;;  %v1362_v56 = vpack.c.bf16 %v2424_v41, %v2426_v27 }
 0x3a2   : > { %2437 = vpow2.f32 %v1195_v43  ;;  %v1143_v58 = vpop.xlane.xlu1 %1142  ;;  %v1134_v53 = vpop.xlane.xlu0 %1133 }
 0x3a3   : > { %v2428_v26 = vpop.eup %2427  ;;  %v1205_v40 = vmul.f32 1.442695, %v1179_v4  ;;  %v1199_v1 = vmul.f32 1.442695, %v1176_v2  ;;  %v1165_v0 = vsub.f32 %v2780_v16, %v1143_v58  ;;  %2269 = vmatpush3.bf16.msra.mxu1 %v1362_v56  ;;  %v1162_v59 = vsub.f32 %v2770_v3, %v1134_v53 }
 0x3a4   : > { %v2430_v19 = vpop.eup %2429  ;;  %1240 = vperm.xlu0 %2383, %v2428_v26   ;;  %2270 = vmatprep.subr.bf16.mxu1 %v3281_v61 }
 0x3a5   : > { %2439 = vpow2.f32 %v1205_v40  ;;  %v1181_v51 = vmin.f32 %v1165_v0, 0.0  ;;  %v1178_v23 = vmin.f32 %v1162_v59, 0.0  ;;  %1230 = vperm.xlu1 %2384, %v2430_v19  }
 0x3a6   : > { %2441 = vpow2.f32 %v1199_v1  ;;  %v1149_v9 = vpop.xlane.xlu1 %1148  ;;  %v1140_v24 = vpop.xlane.xlu0 %1139 }
 0x3a7   : > { %v2432_v31 = vpop.eup %2431  ;;  %v1209_v5 = vmul.f32 1.442695, %v1181_v51  ;;  %v1203_v20 = vmul.f32 1.442695, %v1178_v23  ;;  %v1167_v13 = vsub.f32 %v2791_v32, %v1149_v9  ;;  %v1164_v16 = vsub.f32 %v2761_v63, %v1140_v24  ;;  %v3284_v23 = vld [vmem:[#allocation3_spill] sm:$0xff] }
 0x3a8   : > { %v2434_v25 = vpop.eup %2433  ;;  %1250 = vperm.xlu0 %2383, %v2432_v31  }
 0x3a9   : > { %2443 = vpow2.f32 %v1209_v5  ;;  %v1183_v3 = vmin.f32 %v1167_v13, 0.0  ;;  %v1180_v11 = vmin.f32 %v1164_v16, 0.0  ;;  %1235 = vperm.xlu1 %2384, %v2434_v25   ;;  %v1363_v17 = vpack.c.bf16 %v2434_v25, %v2430_v19  ;;  %v3283_v19 = vld [vmem:[#allocation2_spill] sm:$0xff] }
 0x3aa   : > { %2445 = vpow2.f32 %v1203_v20  ;;  %v1146_v34 = vpop.xlane.xlu0 %1145 }
 0x3ab   : > { %v2436_v37 = vpop.eup %2435  ;;  %v1213_v12 = vmul.f32 1.442695, %v1183_v3  ;;  %v1207_v15 = vmul.f32 1.442695, %v1180_v11  ;;  %2271 = vmatpush3.bf16.msra.mxu1 %v1363_v17  ;;  %v1166_v18 = vsub.f32 %v2785_v29, %v1146_v34  ;;  %v3287_v3 = vld [vmem:[#allocation5_spill] sm:$0xff]  ;;  %v3288_v17 = vld [vmem:[#allocation7_spill] sm:$0xff] }
 0x3ac   : > { %v2438_v28 = vpop.eup %2437  ;;  %1260 = vperm.xlu0 %2383, %v2436_v37   ;;  %2272 = vmatprep.subr.bf16.mxu1 %v3281_v61 }
 0x3ad   : > { %2447 = vpow2.f32 %v1213_v12  ;;  %v1182_v63 = vmin.f32 %v1166_v18, 0.0  ;;  %1245 = vperm.xlu1 %2384, %v2438_v28   ;;  %v1364_v32 = vpack.c.bf16 %v2438_v28, %v2428_v26  ;;  %v3290_v28 = vld [vmem:[#allocation12_spill] sm:$0xff] }
 0x3ae   : > { %2449 = vpow2.f32 %v1207_v15  ;;  %v1152_v30 = vpop.xlane.xlu0 %1151  ;;  %v3289_v15 = vld [vmem:[#allocation10_spill] sm:$0xff] }
 0x3af   : > { %v2440_v36 = vpop.eup %2439  ;;  %v1211_v38 = vmul.f32 1.442695, %v1182_v63  ;;  %2273 = vmatpush3.bf16.msra.mxu1 %v1364_v32  ;;  %v1168_v44 = vsub.f32 %v2794_v33, %v1152_v30 }
 0x3b0   : > { %v2442_v42 = vpop.eup %2441  ;;  %1270 = vperm.xlu0 %2383, %v2440_v36   ;;  %2274 = vmatprep.subr.bf16.mxu1 %v3281_v61 }
 0x3b1   : > { %2451 = vpow2.f32 %v1211_v38  ;;  %v1184_v29 = vmin.f32 %v1168_v44, 0.0  ;;  %1255 = vperm.xlu1 %2384, %v2442_v42   ;;  %v1365_v49 = vpack.c.bf16 %v2442_v42, %v2432_v31  ;;  %v3285_v31 = vld [vmem:[#allocation6_spill] sm:$0xff]  ;;  %v3291_v38 = vld [vmem:[#allocation9_spill] sm:$0xff]  ;;  %v3292_v42 = vld [vmem:[#allocation11_spill] sm:$0xff] }
 0x3b3   : > { %v2444_v48 = vpop.eup %2443  ;;  %v1215_v21 = vmul.f32 1.442695, %v1184_v29  ;;  %2275 = vmatpush3.bf16.msra.mxu1 %v1365_v49 }
 0x3b4   : > { %v2446_v22 = vpop.eup %2445  ;;  %1280 = vperm.xlu0 %2383, %v2444_v48   ;;  %2276 = vmatprep.subr.bf16.mxu1 %v3281_v61 }
 0x3b5   : > { %2453 = vpow2.f32 %v1215_v21  ;;  %1265 = vperm.xlu1 %2384, %v2446_v22   ;;  %v1366_v54 = vpack.c.bf16 %v2446_v22, %v2436_v37  ;;  %v2396_v21 = vld [vmem:[%s3203_s6 + $0x8] sm:$0xff]   ;;  %v2397_v22 = vld [vmem:[%s3203_s6 + $0x10] sm:$0xff]  }
 0x3b7   : > { %v2448_v55 = vpop.eup %2447  ;;  %2277 = vmatpush3.bf16.msra.mxu1 %v1366_v54  ;;  %v2398_v54 = vld [vmem:[%s3203_s6 + $0x18] sm:$0xff]  }
 0x3b8   : > { %v2450_v33 = vpop.eup %2449  ;;  %1290 = vperm.xlu0 %2383, %v2448_v55   ;;  %2278 = vmatprep.subr.bf16.mxu1 %v3281_v61 }
 0x3b9   : > { %1275 = vperm.xlu1 %2384, %v2450_v33   ;;  %v1367_v35 = vpack.c.bf16 %v2450_v33, %v2440_v36  ;;  %v2400_v33 = vld [vmem:[%s3203_s6 + $0x28] sm:$0xff]  }
 0x3bb   : > { %v2452_v45 = vpop.eup %2451  ;;  %2279 = vmatpush3.bf16.msra.mxu1 %v1367_v35 }
 0x3bc   : > { %2280 = vmatprep.subr.bf16.mxu1 %v3281_v61  ;;  %v1368_v60 = vpack.c.bf16 %v2452_v45, %v2444_v48  ;;  %v2395_v48 = vld [vmem:[%s3203_s6] sm:$0xff]  }
 0x3bd   : > { %1285 = vperm.xlu1 %2384, %v2452_v45  }
 0x3bf   : > { %v2454_v50 = vpop.eup %2453  ;;  %2281 = vmatpush3.bf16.msra.mxu1 %v1368_v60 }
 0x3c0   : > { %2282 = vmatprep.subr.bf16.mxu1 %v3281_v61  ;;  %v1369_v52 = vpack.c.bf16 %v2454_v50, %v2448_v55  ;;  %v2399_v55 = vld [vmem:[%s3203_s6 + $0x20] sm:$0xff]  }
 0x3c1   : > { %1295 = vperm.xlu1 %2384, %v2454_v50  }
 0x3c3   : > { %2283 = vmatpush3.bf16.msra.mxu1 %v1369_v52 }
 0x3c4   : > { %2308 = vmatprep.subr.bf16.mxu1 %v3281_v61 }
 0x3c6   : > { %2285 = vmatmul.mubr.bf16.vlgmr.msra.gmra.mrb[16].mxu1 %v1217_v46 }
 0x3c7   : > { %2310 = vmatprep.mubr.msk.bf16.mxu1 %vm2471_vm0, %v3281_v61 }
 0x41f   : > { %v1226_v47 = vpop.permute.xlu0 %1225 }
 0x420   : > { %v1221_v41 = vpop.permute.xlu1 %1220  ;;  %v1299_v39 = vmul.f32 %v1226_v47, %v2662_v10  ;;  %v3282_v10 = vld [vmem:[#allocation4_spill] sm:$0xff] }
 0x421   : > { %v1298_v43 = vmul.f32 %v1221_v41, %v2656_v7  ;;  %v2402_v41 = vld [vmem:[%s3203_s6 + $0x38] sm:$0xff]  }
 0x423   : > { %v1314_v62 = vpack.c.bf16 %v1299_v39, %v1298_v43  ;;  %v1241_v57 = vpop.permute.xlu0 %1240 }
 0x424   : > { %v1231_v27 = vpop.permute.xlu1 %1230  ;;  %v1302_v1 = vmul.f32 %v1241_v57, %v2668_v14  ;;  %v3286_v14 = vld [vmem:[#allocation8_spill] sm:$0xff] }
 0x425   : > { %2249 = vmatpush3.bf16.msra.mxu0 %v1314_v62  ;;  %v1300_v56 = vmul.f32 %v2654_v6, %v1231_v27 }
 0x426   : > { %2250 = vmatprep.subr.bf16.mxu0 %v3281_v61 }
 0x427   : > { %v1251_v4 = vpop.permute.xlu0 %1250 }
 0x428   : > { %v1236_v2 = vpop.permute.xlu1 %1235  ;;  %v1304_v51 = vmul.f32 %v3283_v19, %v1251_v4 }
 0x429   : > { %v1301_v58 = vmul.f32 %v2658_v8, %v1236_v2 }
 0x42b   : > { %v1315_v53 = vpack.c.bf16 %v1301_v58, %v1300_v56  ;;  %v1261_v40 = vpop.permute.xlu0 %1260  ;;  %v1435_v56 = vld [vmem:[%s3204_s7] sm:$0xff] }
 0x42c   : > { %v1246_v26 = vpop.permute.xlu1 %1245  ;;  %v1306_v5 = vmul.f32 %v1261_v40, %v3285_v31 }
 0x42d   : > { %v1303_v0 = vmul.f32 %v1246_v26, %v3282_v10  ;;  %2251 = vmatpush3.bf16.msra.mxu0 %v1315_v53  ;;  %v1524_v10 = vld [vmem:[%s3206_s9] sm:$0xff] }
 0x42e   : > { %2252 = vmatprep.subr.bf16.mxu0 %v3281_v61  ;;  %vm1525_vm2 = vcmp.gt.f32.partialorder %v1524_v10, 0.5 }
 0x42f   : > { %v1316_v7 = vpack.c.bf16 %v1303_v0, %v1302_v1  ;;  %v1271_v6 = vpop.permute.xlu0 %1270 }
 0x430   : > { %v1256_v59 = vpop.permute.xlu1 %1255  ;;  %v1308_v11 = vmul.f32 %v3287_v3, %v1271_v6 }
 0x431   : > { %v1305_v9 = vmul.f32 %v3284_v23, %v1256_v59  ;;  %2253 = vmatpush3.bf16.msra.mxu0 %v1316_v7 }
 0x432   : > { %2254 = vmatprep.subr.bf16.mxu0 %v3281_v61 }
 0x433   : > { %v1317_v8 = vpack.c.bf16 %v1305_v9, %v1304_v51  ;;  %v1281_v16 = vpop.permute.xlu0 %1280 }
 0x434   : > { %v1266_v24 = vpop.permute.xlu1 %1265  ;;  %v1310_v18 = vmul.f32 %v1281_v16, %v3289_v15  ;;  %v2403_v15 = vld [vmem:[%s3207_s10] sm:$0xff]  }
 0x435   : > { %v1307_v20 = vmul.f32 %v1266_v24, %v3286_v14  ;;  %2255 = vmatpush3.bf16.msra.mxu0 %v1317_v8 }
 0x436   : > { %2256 = vmatprep.subr.bf16.mxu0 %v3281_v61 }
 0x437   : > { %v1318_v13 = vpack.c.bf16 %v1307_v20, %v1306_v5  ;;  %v1291_v32 = vpop.permute.xlu0 %1290 }
 0x438   : > { %v1276_v25 = vpop.permute.xlu1 %1275  ;;  %v1312_v44 = vmul.f32 %v3291_v38, %v1291_v32  ;;  %v2407_v32 = vld [vmem:[%s3207_s10 + $0x20] sm:$0xff]  }
 0x439   : > { %v1309_v34 = vmul.f32 %v3288_v17, %v1276_v25  ;;  %2257 = vmatpush3.bf16.msra.mxu0 %v1318_v13 }
 0x43a   : > { %2258 = vmatprep.subr.bf16.mxu0 %v3281_v61 }
 0x43b   : > { %v1319_v37 = vpack.c.bf16 %v1309_v34, %v1308_v11  ;;  %v1547_v11 = vld [vmem:[%s3205_s8] sm:$0xf] }
 0x43c   : > { %v1286_v12 = vpop.permute.xlu1 %1285 }
 0x43d   : > { %v1311_v63 = vmul.f32 %v1286_v12, %v3290_v28  ;;  %2259 = vmatpush3.bf16.msra.mxu0 %v1319_v37  ;;  %v2405_v28 = vld [vmem:[%s3207_s10 + $0x10] sm:$0xff]  }
 0x43e   : > { %2260 = vmatprep.subr.bf16.mxu0 %v3281_v61 }
 0x43f   : > { %v1320_v30 = vpack.c.bf16 %v1311_v63, %v1310_v18  ;;  %v2404_v18 = vld [vmem:[%s3207_s10 + $0x8] sm:$0xff]   ;;  %v2406_v63 = vld [vmem:[%s3207_s10 + $0x18] sm:$0xff]  }
 0x440   : > { %v1296_v36 = vpop.permute.xlu1 %1295 }
 0x441   : > { %v1313_v29 = vmul.f32 %v3292_v42, %v1296_v36  ;;  %2261 = vmatpush3.bf16.msra.mxu0 %v1320_v30  ;;  %v2408_v30 = vld [vmem:[%s3207_s10 + $0x28] sm:$0xff]   ;;  %v2409_v36 = vld [vmem:[%s3207_s10 + $0x30] sm:$0xff]  }
 0x442   : > { %2262 = vmatprep.subr.bf16.mxu0 %v3281_v61 }
 0x443   : > { %v1321_v49 = vpack.c.bf16 %v1313_v29, %v1312_v44 }
 0x445   : > { %2263 = vmatpush3.bf16.msra.mxu0 %v1321_v49 }
 0x446   : > { %2288 = vmatprep.subr.bf16.mxu0 %v3281_v61 }
 0x448   : > { %2265 = vmatmul.mubr.bf16.vlgmr.msra.gmra.mrb[16].mxu0 %v1217_v46  ;;  %v2401_v46 = vld [vmem:[%s3203_s6 + $0x30] sm:$0xff]  }
 0x449   : > { %2289 = vmatpush3.bf16.msra.mxu0 %v2395_v48  ;;  %2304 = vmatprep.mubr.msk.bf16.mxu0 %vm2471_vm0, %v3281_v61  ;;  %v3297_v48 = vlaneseq }
 0x44a   : > { %2290 = vmatprep.subr.bf16.mxu0 %v3281_v61 }
 0x44d   : > { %2291 = vmatpush3.bf16.msra.mxu0 %v2396_v21  ;;  %v1655_v21 = vshrl.u32 %v3297_v48, 7 }
 0x44e   : > { %2292 = vmatprep.subr.bf16.mxu0 %v3281_v61 }
 0x451   : > { %2293 = vmatpush3.bf16.msra.mxu0 %v2397_v22  ;;  %v1656_v22 = vsub.s32 2, %v1655_v21 }
 0x452   : > { %2294 = vmatprep.subr.bf16.mxu0 %v3281_v61 }
 0x455   : > { %2295 = vmatpush3.bf16.msra.mxu0 %v2398_v54 }
 0x456   : > { %2296 = vmatprep.subr.bf16.mxu0 %v3281_v61 }
 0x459   : > { %2297 = vmatpush3.bf16.msra.mxu0 %v2399_v55 }
 0x45a   : > { %2298 = vmatprep.subr.bf16.mxu0 %v3281_v61 }
 0x45d   : > { %2299 = vmatpush3.bf16.msra.mxu0 %v2400_v33 }
 0x45e   : > { %2300 = vmatprep.subr.bf16.mxu0 %v3281_v61 }
 0x461   : > { %2301 = vmatpush3.bf16.msra.mxu0 %v2401_v46  ;;  %v2415_v46 = vld [vmem:[%s3208_s11 + $0x20] sm:$0xff]  }
 0x462   : > { %2302 = vmatprep.subr.bf16.mxu0 %v3281_v61 }
 0x465   : > { %2303 = vmatpush3.bf16.msra.mxu0 %v2402_v41  ;;  %v2417_v41 = vld [vmem:[%s3208_s11 + $0x30] sm:$0xff]  }
 0x466   : > { %2314 = vmatprep.subr.bf16.mxu0 %v3281_v61 }
 0x499   : > { %v1404_v35 = vpop.f32.mrb[16].mxu1 }
 0x49a   : > { %v1410_v45 = vmax.f32 %v1404_v35, 1e-30  ;;  %v2286_v60 = vpop.f32.mrb[17].mxu1  ;;  %v2410_v35 = vld [vmem:[%s3207_s10 + $0x38] sm:$0xff]  }
 0x49b   : > { %v1407_v50 = vpop.f32.mrb[18].mxu1  ;;  %v2412_v60 = vld [vmem:[%s3208_s11 + $0x8] sm:$0xff]  }
 0x49c   : > { %2455 = vrcp.f32 %v1410_v45  ;;  %v2287_v52 = vpop.f32.mrb[19].mxu1  ;;  %v2411_v45 = vld [vmem:[%s3208_s11] sm:$0xff]   ;;  %v2413_v50 = vld [vmem:[%s3208_s11 + $0x10] sm:$0xff]  }
 0x49d   : > { %v2414_v52 = vld [vmem:[%s3208_s11 + $0x18] sm:$0xff]  }
 0x4a6   : > { %v2456_v47 = vpop.eup %2455 }
 0x4a7   : > { %1414 = vperm.xlu0 %2383, %v2456_v47   ;;  %v2416_v47 = vld [vmem:[%s3208_s11 + $0x28] sm:$0xff]  }
 0x51b   : > { %v1356_v39 = vpop.f32.mrb[16].mxu0 }
 0x51c   : > { %v2266_v43 = vpop.f32.mrb[17].mxu0 }
 0x51d   : > { %v1359_v62 = vpop.f32.mrb[18].mxu0 }
 0x51e   : > { %v2267_v57 = vpop.f32.mrb[19].mxu0 }
 0x526   : > { %v1415_v27 = vpop.permute.xlu0 %1414 }
 0x527   : > { %v1417_v4 = vmul.f32 %v1415_v27, %v1356_v39 }
 0x529   : > { %v1418_v2 = vpack.c.bf16 %v1417_v4, %v1417_v4 }
 0x52b   : > { %2305 = vmatmul.mubr.bf16.vlgmr.msra.gmra.mrb[20].mxu0 %v1418_v2 }
 0x52c   : > { %2316 = vmatprep.mubr.msk.bf16.mxu0 %vm2471_vm0, %v3281_v61 }
 0x5fe   : > { %v1518_v58 = vpop.f32.mrb[20].mxu0 }
 0x5ff   : > { %v1519_v53 = vadd.f32 %v1518_v58, %v1435_v56  ;;  %v2306_v26 = vpop.f32.mrb[21].mxu0  ;;  %v2418_v58 = vld [vmem:[%s3208_s11 + $0x38] sm:$0xff]  }
 0x600   : > { %v1521_v40 = vpop.f32.mrb[22].mxu0  ;;  %v2420_v26 = vld [vmem:[%s3209_s12 + $0x8] sm:$0xff]  }
 0x601   : > { %1528 = vperm.xlu1 %2384, %v1519_v53   ;;  %v2307_v1 = vpop.f32.mrb[23].mxu0  ;;  %v2421_v40 = vld [vmem:[%s3209_s12 + $0x10] sm:$0xff]  }
 0x680   : > { %v1529_v0 = vpop.permute.xlu1 %1528 }
 0x681   : > { %v1531_v7 = vsel %vm1525_vm2, %v1529_v0, -1e+30 }
 0x682   : > { %v1532_v59 = vsel %vm3293_vm11, %v1531_v7, -inf }
 0x683   : > { %v1533_v19 = vrot.slane %v1532_v59, 4 }
 0x685   : > { %v1534_v51 = vmax.f32 %v1532_v59, %v1533_v19 }
 0x687   : > { %v1535_v23 = vrot.slane %v1534_v51, 2 }
 0x689   : > { %v1536_v9 = vmax.f32 %v1534_v51, %v1535_v23  ;;  %v2422_v51 = vld [vmem:[%s3209_s12 + $0x18] sm:$0xff]  }
 0x68b   : > { %v1537_v6 = vrot.slane %v1536_v9, 1 }
 0x68d   : > { %v1538_v8 = vmax.f32 %v1536_v9, %v1537_v6 }
 0x68f   : > { %v1539_v24 = vsel %vm1525_vm2, %v1538_v8, -1e+30 }
 0x690   : > { %v1540_v31 = vsel %vm3294_vm15, %v1539_v24, -inf }
 0x691   : > { %1541 = vmax.xlane.f32.xlu0 %v1540_v31 }
 0x71e   : > { %v1542_v5 = vpop.xlane.xlu0 %1541 }
 0x71f   : > { %v1543_v14 = vsub.f32 %v1519_v53, %v1542_v5  ;;  %v2419_v53 = vld [vmem:[%s3209_s12] sm:$0xff]  }
 0x721   : > { %v1544_v20 = vmin.f32 %v1543_v14, 0.0 }
 0x723   : > { %v1545_v13 = vmul.f32 1.442695, %v1544_v20 }
 0x725   : > { %2457 = vpow2.f32 %v1545_v13 }
 0x72f   : > { %v2458_v16 = vpop.eup %2457 }
 0x730   : > { %1550 = vperm.xlu1 %2384, %v2458_v16   ;;  %v1602_v25 = vpack.c.bf16 %v2458_v16, %v2458_v16 }
 0x732   : > { %v1604_v3 = vsel %vm1558_vm6, %v1602_v25, 0 }
 0x733   : > { %2315 = vmatpush3.bf16.msra.mxu0 %v1604_v3 }
 0x734   : > { %2340 = vmatprep.subr.bf16.mxu0 %v3281_v61 }
 0x736   : > { %2317 = vmatmul.mubr.msk.bf16.vlgmr.msra.gmra.mrb[24].mxu0 %vm3295_vm13, %v1547_v11 }
 0x737   : > { %2356 = vmatprep.mubr.msk.bf16.mxu0 %vm2471_vm0, %v3281_v61  ;;  %2341 = vmatpush3.bf16.msra.mxu0 %v2411_v45 }
 0x738   : > { %2342 = vmatprep.subr.bf16.mxu0 %v3281_v61 }
 0x73b   : > { %2343 = vmatpush3.bf16.msra.mxu0 %v2412_v60 }
 0x73c   : > { %2344 = vmatprep.subr.bf16.mxu0 %v3281_v61 }
 0x73f   : > { %2345 = vmatpush3.bf16.msra.mxu0 %v2413_v50 }
 0x740   : > { %2346 = vmatprep.subr.bf16.mxu0 %v3281_v61 }
 0x743   : > { %2347 = vmatpush3.bf16.msra.mxu0 %v2414_v52 }
 0x744   : > { %2348 = vmatprep.subr.bf16.mxu0 %v3281_v61 }
 0x747   : > { %2349 = vmatpush3.bf16.msra.mxu0 %v2415_v46 }
 0x748   : > { %2350 = vmatprep.subr.bf16.mxu0 %v3281_v61 }
 0x74b   : > { %2351 = vmatpush3.bf16.msra.mxu0 %v2416_v47 }
 0x74c   : > { %2352 = vmatprep.subr.bf16.mxu0 %v3281_v61 }
 0x74f   : > { %2353 = vmatpush3.bf16.msra.mxu0 %v2417_v41 }
 0x750   : > { %2354 = vmatprep.subr.bf16.mxu0 %v3281_v61 }
 0x753   : > { %2355 = vmatpush3.bf16.msra.mxu0 %v2418_v58 }
 0x7af   : > { %v1551_v17 = vpop.permute.xlu1 %1550 }
 0x7b0   : > { %v1553_v34 = vmul.f32 %v1551_v17, %v1417_v4 }
 0x7b2   : > { %v1554_v37 = vpack.c.bf16 %v1553_v34, %v1553_v34 }
 0x7b4   : > { %v1560_v12 = vsel %vm1558_vm6, %v1554_v37, 0 }
 0x7b5   : > { %2309 = vmatpush3.bf16.msra.mxu1 %v1560_v12 }
 0x7b6   : > { %2320 = vmatprep.subr.bf16.mxu1 %v3281_v61 }
 0x7b8   : > { %2311 = vmatmul.mubr.msk.bf16.vlgmr.msra.gmra.mrb[20].mxu1 %vm3296_vm7, %v1547_v11 }
 0x7b9   : > { %2321 = vmatpush3.bf16.msra.mxu1 %v2403_v15  ;;  %2336 = vmatprep.mubr.msk.bf16.mxu1 %vm2471_vm0, %v3281_v61 }
 0x7ba   : > { %2322 = vmatprep.subr.bf16.mxu1 %v3281_v61 }
 0x7bd   : > { %2323 = vmatpush3.bf16.msra.mxu1 %v2404_v18 }
 0x7be   : > { %2324 = vmatprep.subr.bf16.mxu1 %v3281_v61 }
 0x7c1   : > { %2325 = vmatpush3.bf16.msra.mxu1 %v2405_v28 }
 0x7c2   : > { %2326 = vmatprep.subr.bf16.mxu1 %v3281_v61 }
 0x7c5   : > { %2327 = vmatpush3.bf16.msra.mxu1 %v2406_v63 }
 0x7c6   : > { %2328 = vmatprep.subr.bf16.mxu1 %v3281_v61 }
 0x7c9   : > { %2329 = vmatpush3.bf16.msra.mxu1 %v2407_v32 }
 0x7ca   : > { %2330 = vmatprep.subr.bf16.mxu1 %v3281_v61 }
 0x7cd   : > { %2331 = vmatpush3.bf16.msra.mxu1 %v2408_v30 }
 0x7ce   : > { %2332 = vmatprep.subr.bf16.mxu1 %v3281_v61 }
 0x7d1   : > { %2333 = vmatpush3.bf16.msra.mxu1 %v2409_v36 }
 0x7d2   : > { %2334 = vmatprep.subr.bf16.mxu1 %v3281_v61 }
 0x7d5   : > { %2335 = vmatpush3.bf16.msra.mxu1 %v2410_v35 }
 0x7d6   : > { %2360 = vmatprep.subr.bf16.mxu1 %v3281_v61 }
 0x809   : > { %v1640_v38 = vpop.f32.mrb[24].mxu0 }
 0x80a   : > { %v1646_v44 = vmax.f32 %v1640_v38, 1e-30  ;;  %v2318_v42 = vpop.f32.mrb[25].mxu0 }
 0x80b   : > { %v1643_v29 = vpop.f32.mrb[26].mxu0 }
 0x80c   : > { %2459 = vrcp.f32 %v1646_v44  ;;  %v2319_v49 = vpop.f32.mrb[27].mxu0 }
 0x816   : > { %v2460_v54 = vpop.eup %2459 }
 0x817   : > { %1650 = vperm.xlu1 %2384, %v2460_v54   ;;  %v1657_v55 = vrot.slane %v2460_v54, %v1656_v22 }
 0x819   : > { %v1658_v33 = vmul.f32 %v2458_v16, %v1657_v55 }
 0x81b   : > { %1661 = vperm.xlu1 %2384, %v1658_v33  }
 0x88b   : > { %v1596_v39 = vpop.f32.mrb[20].mxu1 }
 0x88c   : > { %v2312_v43 = vpop.f32.mrb[21].mxu1 }
 0x88d   : > { %v1599_v62 = vpop.f32.mrb[22].mxu1 }
 0x88e   : > { %v2313_v57 = vpop.f32.mrb[23].mxu1 }
 0x896   : > { %v1651_v27 = vpop.permute.xlu1 %1650 }
 0x897   : > { %v1653_v4 = vmul.f32 %v1651_v27, %v1596_v39 }
 0x899   : > { %v1665_v2 = vpack.c.bf16 %v1653_v4, %v1653_v4 }
 0x89a   : > { %v1662_v56 = vpop.permute.xlu1 %1661 }
 0x89b   : > { %1664 = vst [vmem:[%s476_s20] sm:$0xff] %v1662_v56  ;;  %2337 = vmatmul.mubr.bf16.vlgmr.msra.gmra.mrb[24].mxu1 %v1665_v2  ;;  %s472_s20 = scalar_lea.vmem %s3210_s13, %s2046_s17 }
 0x89c   : > { %2368 = vmatprep.mubr.msk.bf16.mxu1 %vm2471_vm0, %v3281_v61  ;;  %2361 = vmatpush3.bf16.msra.mxu1 %v2419_v53 }
 0x89d   : > { %2362 = vmatprep.subr.bf16.mxu1 %v3281_v61 }
 0x8a0   : > { %2363 = vmatpush3.bf16.msra.mxu1 %v2420_v26 }
 0x8a1   : > { %2364 = vmatprep.subr.bf16.mxu1 %v3281_v61 }
 0x8a4   : > { %2365 = vmatpush3.bf16.msra.mxu1 %v2421_v40 }
 0x8a5   : > { %2366 = vmatprep.subr.bf16.mxu1 %v3281_v61 }
 0x8a8   : > { %2367 = vmatpush3.bf16.msra.mxu1 %v2422_v51 }
 0x96e   : > { %v1764_v1 = vpop.f32.mrb[24].mxu1 }
 0x96f   : > { %v1770_v10 = vmax.f32 %v1764_v1, 0.0  ;;  %v2338_v0 = vpop.f32.mrb[25].mxu1 }
 0x970   : > { %v1767_v7 = vpop.f32.mrb[26].mxu1 }
 0x971   : > { %v1771_v59 = vpack.c.bf16 %v1770_v10, %v1770_v10  ;;  %v2339_v19 = vpop.f32.mrb[27].mxu1 }
 0x973   : > { %2357 = vmatmul.mubr.bf16.vlgmr.msra.gmra.mrb[28].mxu0 %v1771_v59 }
 0xa46   : > { %v1870_v23 = vpop.f32.mrb[28].mxu0 }
 0xa47   : > { %v1876_v9 = vmax.f32 %v1870_v23, 0.0  ;;  %v2358_v6 = vpop.f32.mrb[29].mxu0 }
 0xa48   : > { %v1873_v8 = vpop.f32.mrb[30].mxu0 }
 0xa49   : > { %v1877_v24 = vpack.c.bf16 %v1876_v9, %v1876_v9  ;;  %v2359_v61 = vpop.f32.mrb[31].mxu0 }
 0xa4b   : > { %2369 = vmatmul.mubr.msk.bf16.vlgmr.msra.gmra.mrb[28].mxu1 %vm1910_vm9, %v1877_v24 }
 0xb1e   : > { %v1948_v31 = vpop.f32.mrb[28].mxu1 }
 0xb1f   : > { %1954 = vst [vmem:[%s472_s20] sm:$0xff] %v1948_v31  ;;  %v2370_v5 = vpop.f32.mrb[29].mxu1 }
 0xb20   : > { %v1951_v14 = vpop.f32.mrb[30].mxu1 }
 0xb21   : > { %v2371_v20 = vpop.f32.mrb[31].mxu1 }
 0xb22 PF: > { %s25_s29 = sadd.s32 1, %s2467_s29  }
 0xb23   : > { %p22_p4 = scmp.ge.s32.totalorder %s25_s29, 4  }
 0xb25   :  { %24 = sbr.rel (!%p22_p4) target bundleno = 1 (0x1), region = 114 }

</bundles_post_ra>
